<compile_context>
chip_gen: v6e
topology: v6e:2x2x1
jax: 0.10.0
libtpu: 0.0.40
codegen_flags: <defaults>
</compile_context>

<pallas_src>
import jax
import jax.numpy as jnp
from jax.experimental import pallas as pl
from jax.experimental.pallas import tpu as pltpu

EPS = 1e-5  # nn.BatchNorm2d default
TAPS = tuple((dy, dx) for dy in (-1, 0, 1) for dx in (-1, 0, 1))


def _make_kernel(N, H, W, cin, mid, cout, pad):
    """Kernel factory; all shape parameters are static Python ints."""
    HW = H * W
    L = N * HW
    inv_l = 1.0 / L

    def kernel(x_ref, mask_ref, w1_ref, b1_ref, g1_ref, be1_ref,
               w2_ref, b2_ref, g2_ref, be2_ref, out_ref, xp_ref, p_ref):
        cmax = xp_ref.shape[0]

        # ---- zero ONLY the halo of the flat activation buffer (aligned stores) ----
        halo = jnp.zeros((cmax, pad), jnp.float32)
        xp_ref[:, :pad] = halo
        xp_ref[:, pad + L:] = halo

        # ---- conv1 input -> flat channel-major interior (lane-aligned stores) ----
        for n in range(N):
            xp_ref[:cin, pad + n * HW: pad + (n + 1) * HW] = (
                x_ref[n].astype(jnp.float32))

        masks = mask_ref[...]                  # (9, L) 0/1 f32 tap-validity masks

        def conv3x3(nch, w_mat, bias):
            """One GEMM per conv: im2col (9*nch, L) then (co, 9*nch) @ (9*nch, L)."""
            # TODO(synk): on v6e/v7x, bf16 operands (f32 accumulation) would halve
            # VMEM/MXU cost, but exceeds the 1e-3 check tolerance vs. the f32 ref.
            for t, (dy, dx) in enumerate(TAPS):
                off = dy * W + dx
                win = xp_ref[:nch, pad + off: pad + off + L]     # shifted window
                p_ref[t * nch:(t + 1) * nch, :] = win * masks[t:t + 1, :]
            return jnp.dot(w_mat, p_ref[:9 * nch, :],
                           preferred_element_type=jnp.float32) + bias

        def bn(y, g_ref, b_ref):
            """Single-pass batch stats (biased var) folded into scale/shift."""
            s = jnp.sum(y, axis=1, keepdims=True)
            ss = jnp.sum(y * y, axis=1, keepdims=True)
            mean = s * inv_l
            var = ss * inv_l - mean * mean
            scale = g_ref[...].astype(jnp.float32) * jax.lax.rsqrt(var + EPS)
            shift = b_ref[...].astype(jnp.float32) - mean * scale
            return y * scale + shift

        # conv1 -> (mid, L); keep the pre-BN result as the residual identity.
        y1 = conv3x3(cin, w1_ref[...].astype(jnp.float32),
                     b1_ref[...].astype(jnp.float32))
        h = jnp.maximum(bn(y1, g1_ref, be1_ref), 0.0)

        # conv2 input: overwrite only the interior rows with h (halo stays zero).
        for n in range(N):
            xp_ref[:mid, pad + n * HW: pad + (n + 1) * HW] = (
                h[:, n * HW:(n + 1) * HW])

        y2 = conv3x3(mid, w2_ref[...].astype(jnp.float32),
                     b2_ref[...].astype(jnp.float32))
        out = jnp.maximum(bn(y2, g2_ref, be2_ref) + y1, 0.0)

        # lane-dense stores (HW = H*W lanes per row), already in NCHW order.
        for n in range(N):
            out_ref[n] = out[:, n * HW:(n + 1) * HW].astype(out_ref.dtype)

    return kernel


@jax.jit
def conv_block_nested(x_nchw, params):
    """NCHW in / NCHW out. Internally channel-major (C, N*H*W), lane-dense."""
    w1, b1, g1, be1, w2, b2, g2, be2 = params
    N, cin, H, W = x_nchw.shape
    mid, cout = w1.shape[-1], w2.shape[-1]
    assert mid == cout, "residual add requires mid_ch == out_ch"
    HW, L = H * W, N * H * W
    cmax = max(cin, mid)
    pad = ((W + 1 + 127) // 128) * 128      # halo >= W+1, keeps interior lane-aligned

    # GEMM-shaped weights: (cout, 9*cin), tap-major / channel-minor (matches TAPS).
    w1m = jnp.transpose(w1, (3, 0, 1, 2)).reshape(mid, 9 * cin)
    w2m = jnp.transpose(w2, (3, 0, 1, 2)).reshape(cout, 9 * mid)
    b1c, g1c, be1c = [v.reshape(mid, 1) for v in (b1, g1, be1)]
    b2c, g2c, be2c = [v.reshape(cout, 1) for v in (b2, g2, be2)]

    # 3x3 tap-validity masks over the flat (n, h, w) index; constant-folded under jit.
    rows = []
    for dy, dx in TAPS:
        hv = (jnp.arange(H) + dy >= 0) & (jnp.arange(H) + dy < H)
        wv = (jnp.arange(W) + dx >= 0) & (jnp.arange(W) + dx < W)
        rows.append(jnp.tile((hv[:, None] & wv[None, :]).reshape(HW), N))
    tap_mask = jnp.stack(rows).astype(jnp.float32)              # (9, L)

    x_flat = x_nchw.reshape(N, cin, HW)                          # free reshape

    # Scoped-VMEM limit sized to the live buffers (+ generous headroom).
    live_bytes = 4 * (x_flat.size + tap_mask.size + N * cout * HW
                      + cmax * (L + 2 * pad) + 9 * cmax * L + 6 * cmax * L)
    vmem_limit = int(min(100 * 1024 * 1024,
                         max(16 * 1024 * 1024, 8 * live_bytes)))

    # TODO(synk): for large N*H*W (and v7x's 64 MiB VMEM / 2 TensorCores), add a
    # spatial grid with halo'd tiles and a two-phase BN (stats accumulate / apply)
    # so activations need not be fully VMEM-resident; single-call design is used
    # here since the whole problem fits comfortably in VMEM.
    out = pl.pallas_call(
        _make_kernel(N, H, W, cin, mid, cout, pad),
        out_shape=jax.ShapeDtypeStruct((N, cout, HW), jnp.float32),
        in_specs=[pl.BlockSpec(memory_space=pltpu.MemorySpace.VMEM)] * 10,
        out_specs=pl.BlockSpec(memory_space=pltpu.MemorySpace.VMEM),
        scratch_shapes=[
            pltpu.VMEM((cmax, L + 2 * pad), jnp.float32),   # flat zero-haloed acts
            pltpu.VMEM((9 * cmax, L), jnp.float32),         # im2col patch matrix
        ],
        compiler_params=pltpu.CompilerParams(vmem_limit_bytes=vmem_limit),
    )(x_flat, tap_mask, w1m, b1c, g1c, be1c, w2m, b2c, g2c, be2c)

    return out.reshape(N, cout, H, W)


def reference(x_nchw, params):
    """Pure-JAX reference mirroring the PyTorch forward (training-mode BN)."""
    w1, b1, g1, be1, w2, b2, g2, be2 = params

    def conv(x, w, b):
        y = jax.lax.conv_general_dilated(
            x, w, window_strides=(1, 1), padding="SAME",
            dimension_numbers=("NCHW", "HWIO", "NCHW"))
        return y + b.reshape(1, -1, 1, 1)

    def bn(x, g, be):
        mean = x.mean(axis=(0, 2, 3), keepdims=True)
        var = ((x - mean) ** 2).mean(axis=(0, 2, 3), keepdims=True)
        return ((x - mean) / jnp.sqrt(var + EPS)
                * g.reshape(1, -1, 1, 1) + be.reshape(1, -1, 1, 1))

    y1 = conv(x_nchw, w1, b1)
    h = jnp.maximum(bn(y1, g1, be1), 0.0)
    y2 = conv(h, w2, b2)
    return jnp.maximum(bn(y2, g2, be2) + y1, 0.0)


def init_params(key, in_ch, mid_ch, out_ch):
    """Deterministic synthetic parameters (shapes match the nn.Module)."""
    k1, k2, k3, k4 = jax.random.split(key, 4)
    w1 = jax.random.normal(k1, (3, 3, in_ch, mid_ch), jnp.float32) * 0.1   # HWIO
    b1 = jax.random.normal(k2, (1, mid_ch), jnp.float32) * 0.1
    w2 = jax.random.normal(k3, (3, 3, mid_ch, out_ch), jnp.float32) * 0.1  # HWIO
    b2 = jax.random.normal(k4, (1, out_ch), jnp.float32) * 0.1
    g1 = jnp.ones((1, mid_ch), jnp.float32)    # BN weight init = 1
    be1 = jnp.zeros((1, mid_ch), jnp.float32)  # BN bias   init = 0
    g2 = jnp.ones((1, out_ch), jnp.float32)
    be2 = jnp.zeros((1, out_ch), jnp.float32)
    return (w1, b1, g1, be1, w2, b2, g2, be2)


if __name__ == "__main__":
    # Small shapes consistent with the module: mid_ch == out_ch is required
    # by the residual add in the original forward.
    N, in_ch, mid_ch, out_ch, H, W = 2, 4, 8, 8, 16, 16

    key = jax.random.PRNGKey(0)
    kx, kp = jax.random.split(key)
    x = jax.random.normal(kx, (N, in_ch, H, W), jnp.float32)
    params = init_params(kp, in_ch, mid_ch, out_ch)

    out = conv_block_nested(x, params)
    out = jax.block_until_ready(out)

    ref = reference(x, params)
    assert out.shape == ref.shape == (N, out_ch, H, W)
    assert jnp.allclose(out, ref, atol=1e-3, rtol=1e-3), (
        float(jnp.max(jnp.abs(out - ref))))

    print("KERNEL_OK")
</pallas_src>

<mosaic_0001>
module attributes {stable_mosaic.version = 11 : i64} {
  func.func @kernel(%arg0: memref<2x4x256xf32, #tpu.memory_space<vmem>>, %arg1: memref<9x512xf32, #tpu.memory_space<vmem>>, %arg2: memref<8x36xf32, #tpu.memory_space<vmem>>, %arg3: memref<8x1xf32, #tpu.memory_space<vmem>>, %arg4: memref<8x1xf32, #tpu.memory_space<vmem>>, %arg5: memref<8x1xf32, #tpu.memory_space<vmem>>, %arg6: memref<8x72xf32, #tpu.memory_space<vmem>>, %arg7: memref<8x1xf32, #tpu.memory_space<vmem>>, %arg8: memref<8x1xf32, #tpu.memory_space<vmem>>, %arg9: memref<8x1xf32, #tpu.memory_space<vmem>>, %arg10: memref<2x8x256xf32, #tpu.memory_space<vmem>>, %arg11: memref<8x768xf32, #tpu.memory_space<vmem>>, %arg12: memref<72x512xf32, #tpu.memory_space<vmem>>) attributes {dimension_semantics = [], scalar_prefetch = 0 : i64, scratch_operands = 2 : i64, tpu.core_type = #tpu.core_type<tc>} {
    %cst = arith.constant 0.000000e+00 : f32
    %0 = vector.broadcast %cst : f32 to vector<8x128xf32>
    %c0 = arith.constant 0 : index
    %c0_0 = arith.constant 0 : index
    %1 = vector.load %arg11[%c0, %c0_0] : memref<8x768xf32, #tpu.memory_space<vmem>>, vector<8x128xf32>
    tpu.vector_store %arg11[%c0, %c0_0], %0 {strides = array<i32>} : memref<8x768xf32, #tpu.memory_space<vmem>>, vector<8x128xf32>,
    %c0_1 = arith.constant 0 : index
    %c640 = arith.constant 640 : index
    %2 = vector.load %arg11[%c0_1, %c640] : memref<8x768xf32, #tpu.memory_space<vmem>>, vector<8x128xf32>
    tpu.vector_store %arg11[%c0_1, %c640], %0 {strides = array<i32>} : memref<8x768xf32, #tpu.memory_space<vmem>>, vector<8x128xf32>,
    %c0_2 = arith.constant 0 : index
    %c0_3 = arith.constant 0 : index
    %c0_4 = arith.constant 0 : index
    %3 = vector.load %arg0[%c0_2, %c0_3, %c0_4] : memref<2x4x256xf32, #tpu.memory_space<vmem>>, vector<1x4x256xf32>
    %4 = vector.shape_cast %3 : vector<1x4x256xf32> to vector<4x256xf32>
    %c0_5 = arith.constant 0 : index
    %c128 = arith.constant 128 : index
    %5 = vector.load %arg11[%c0_5, %c128] : memref<8x768xf32, #tpu.memory_space<vmem>>, vector<4x256xf32>
    tpu.vector_store %arg11[%c0_5, %c128], %4 {strides = array<i32>} : memref<8x768xf32, #tpu.memory_space<vmem>>, vector<4x256xf32>,
    %c1 = arith.constant 1 : index
    %c0_6 = arith.constant 0 : index
    %c0_7 = arith.constant 0 : index
    %6 = vector.load %arg0[%c1, %c0_6, %c0_7] : memref<2x4x256xf32, #tpu.memory_space<vmem>>, vector<1x4x256xf32>
    %7 = vector.shape_cast %6 : vector<1x4x256xf32> to vector<4x256xf32>
    %c0_8 = arith.constant 0 : index
    %c384 = arith.constant 384 : index
    %8 = vector.load %arg11[%c0_8, %c384] : memref<8x768xf32, #tpu.memory_space<vmem>>, vector<4x256xf32>
    tpu.vector_store %arg11[%c0_8, %c384], %7 {strides = array<i32>} : memref<8x768xf32, #tpu.memory_space<vmem>>, vector<4x256xf32>,
    %c0_9 = arith.constant 0 : index
    %c0_10 = arith.constant 0 : index
    %9 = vector.load %arg1[%c0_9, %c0_10] : memref<9x512xf32, #tpu.memory_space<vmem>>, vector<9x512xf32>
    %c0_11 = arith.constant 0 : index
    %c0_12 = arith.constant 0 : index
    %10 = vector.load %arg2[%c0_11, %c0_12] : memref<8x36xf32, #tpu.memory_space<vmem>>, vector<8x36xf32>
    %c0_13 = arith.constant 0 : index
    %c0_14 = arith.constant 0 : index
    %11 = vector.load %arg3[%c0_13, %c0_14] : memref<8x1xf32, #tpu.memory_space<vmem>>, vector<8x1xf32>
    %c0_15 = arith.constant 0 : index
    %c111 = arith.constant 111 : index
    %12 = vector.load %arg11[%c0_15, %c111] : memref<8x768xf32, #tpu.memory_space<vmem>>, vector<4x512xf32>
    %13 = vector.extract_strided_slice %9 {offsets = [0, 0], sizes = [1, 512], strides = [1, 1]} : vector<9x512xf32> to vector<1x512xf32>
    %14 = vector.broadcast %13 : vector<1x512xf32> to vector<4x512xf32>
    %15 = arith.mulf %12, %14 : vector<4x512xf32>
    %c0_16 = arith.constant 0 : index
    %c0_17 = arith.constant 0 : index
    %16 = vector.load %arg12[%c0_16, %c0_17] : memref<72x512xf32, #tpu.memory_space<vmem>>, vector<4x512xf32>
    tpu.vector_store %arg12[%c0_16, %c0_17], %15 {strides = array<i32>} : memref<72x512xf32, #tpu.memory_space<vmem>>, vector<4x512xf32>,
    %c0_18 = arith.constant 0 : index
    %c112 = arith.constant 112 : index
    %17 = vector.load %arg11[%c0_18, %c112] : memref<8x768xf32, #tpu.memory_space<vmem>>, vector<4x512xf32>
    %18 = vector.extract_strided_slice %9 {offsets = [1, 0], sizes = [1, 512], strides = [1, 1]} : vector<9x512xf32> to vector<1x512xf32>
    %19 = vector.broadcast %18 : vector<1x512xf32> to vector<4x512xf32>
    %20 = arith.mulf %17, %19 : vector<4x512xf32>
    %c4 = arith.constant 4 : index
    %c0_19 = arith.constant 0 : index
    %21 = vector.load %arg12[%c4, %c0_19] : memref<72x512xf32, #tpu.memory_space<vmem>>, vector<4x512xf32>
    tpu.vector_store %arg12[%c4, %c0_19], %20 {strides = array<i32>} : memref<72x512xf32, #tpu.memory_space<vmem>>, vector<4x512xf32>,
    %c0_20 = arith.constant 0 : index
    %c113 = arith.constant 113 : index
    %22 = vector.load %arg11[%c0_20, %c113] : memref<8x768xf32, #tpu.memory_space<vmem>>, vector<4x512xf32>
    %23 = vector.extract_strided_slice %9 {offsets = [2, 0], sizes = [1, 512], strides = [1, 1]} : vector<9x512xf32> to vector<1x512xf32>
    %24 = vector.broadcast %23 : vector<1x512xf32> to vector<4x512xf32>
    %25 = arith.mulf %22, %24 : vector<4x512xf32>
    %c8 = arith.constant 8 : index
    %c0_21 = arith.constant 0 : index
    %26 = vector.load %arg12[%c8, %c0_21] : memref<72x512xf32, #tpu.memory_space<vmem>>, vector<4x512xf32>
    tpu.vector_store %arg12[%c8, %c0_21], %25 {strides = array<i32>} : memref<72x512xf32, #tpu.memory_space<vmem>>, vector<4x512xf32>,
    %c0_22 = arith.constant 0 : index
    %c127 = arith.constant 127 : index
    %27 = vector.load %arg11[%c0_22, %c127] : memref<8x768xf32, #tpu.memory_space<vmem>>, vector<4x512xf32>
    %28 = vector.extract_strided_slice %9 {offsets = [3, 0], sizes = [1, 512], strides = [1, 1]} : vector<9x512xf32> to vector<1x512xf32>
    %29 = vector.broadcast %28 : vector<1x512xf32> to vector<4x512xf32>
    %30 = arith.mulf %27, %29 : vector<4x512xf32>
    %c12 = arith.constant 12 : index
    %c0_23 = arith.constant 0 : index
    %31 = vector.load %arg12[%c12, %c0_23] : memref<72x512xf32, #tpu.memory_space<vmem>>, vector<4x512xf32>
    tpu.vector_store %arg12[%c12, %c0_23], %30 {strides = array<i32>} : memref<72x512xf32, #tpu.memory_space<vmem>>, vector<4x512xf32>,
    %c0_24 = arith.constant 0 : index
    %c128_25 = arith.constant 128 : index
    %32 = vector.load %arg11[%c0_24, %c128_25] : memref<8x768xf32, #tpu.memory_space<vmem>>, vector<4x512xf32>
    %33 = vector.extract_strided_slice %9 {offsets = [4, 0], sizes = [1, 512], strides = [1, 1]} : vector<9x512xf32> to vector<1x512xf32>
    %34 = vector.broadcast %33 : vector<1x512xf32> to vector<4x512xf32>
    %35 = arith.mulf %32, %34 : vector<4x512xf32>
    %c16 = arith.constant 16 : index
    %c0_26 = arith.constant 0 : index
    %36 = vector.load %arg12[%c16, %c0_26] : memref<72x512xf32, #tpu.memory_space<vmem>>, vector<4x512xf32>
    tpu.vector_store %arg12[%c16, %c0_26], %35 {strides = array<i32>} : memref<72x512xf32, #tpu.memory_space<vmem>>, vector<4x512xf32>,
    %c0_27 = arith.constant 0 : index
    %c129 = arith.constant 129 : index
    %37 = vector.load %arg11[%c0_27, %c129] : memref<8x768xf32, #tpu.memory_space<vmem>>, vector<4x512xf32>
    %38 = vector.extract_strided_slice %9 {offsets = [5, 0], sizes = [1, 512], strides = [1, 1]} : vector<9x512xf32> to vector<1x512xf32>
    %39 = vector.broadcast %38 : vector<1x512xf32> to vector<4x512xf32>
    %40 = arith.mulf %37, %39 : vector<4x512xf32>
    %c20 = arith.constant 20 : index
    %c0_28 = arith.constant 0 : index
    %41 = vector.load %arg12[%c20, %c0_28] : memref<72x512xf32, #tpu.memory_space<vmem>>, vector<4x512xf32>
    tpu.vector_store %arg12[%c20, %c0_28], %40 {strides = array<i32>} : memref<72x512xf32, #tpu.memory_space<vmem>>, vector<4x512xf32>,
    %c0_29 = arith.constant 0 : index
    %c143 = arith.constant 143 : index
    %42 = vector.load %arg11[%c0_29, %c143] : memref<8x768xf32, #tpu.memory_space<vmem>>, vector<4x512xf32>
    %43 = vector.extract_strided_slice %9 {offsets = [6, 0], sizes = [1, 512], strides = [1, 1]} : vector<9x512xf32> to vector<1x512xf32>
    %44 = vector.broadcast %43 : vector<1x512xf32> to vector<4x512xf32>
    %45 = arith.mulf %42, %44 : vector<4x512xf32>
    %c24 = arith.constant 24 : index
    %c0_30 = arith.constant 0 : index
    %46 = vector.load %arg12[%c24, %c0_30] : memref<72x512xf32, #tpu.memory_space<vmem>>, vector<4x512xf32>
    tpu.vector_store %arg12[%c24, %c0_30], %45 {strides = array<i32>} : memref<72x512xf32, #tpu.memory_space<vmem>>, vector<4x512xf32>,
    %c0_31 = arith.constant 0 : index
    %c144 = arith.constant 144 : index
    %47 = vector.load %arg11[%c0_31, %c144] : memref<8x768xf32, #tpu.memory_space<vmem>>, vector<4x512xf32>
    %48 = vector.extract_strided_slice %9 {offsets = [7, 0], sizes = [1, 512], strides = [1, 1]} : vector<9x512xf32> to vector<1x512xf32>
    %49 = vector.broadcast %48 : vector<1x512xf32> to vector<4x512xf32>
    %50 = arith.mulf %47, %49 : vector<4x512xf32>
    %c28 = arith.constant 28 : index
    %c0_32 = arith.constant 0 : index
    %51 = vector.load %arg12[%c28, %c0_32] : memref<72x512xf32, #tpu.memory_space<vmem>>, vector<4x512xf32>
    tpu.vector_store %arg12[%c28, %c0_32], %50 {strides = array<i32>} : memref<72x512xf32, #tpu.memory_space<vmem>>, vector<4x512xf32>,
    %c0_33 = arith.constant 0 : index
    %c145 = arith.constant 145 : index
    %52 = vector.load %arg11[%c0_33, %c145] : memref<8x768xf32, #tpu.memory_space<vmem>>, vector<4x512xf32>
    %53 = vector.extract_strided_slice %9 {offsets = [8, 0], sizes = [1, 512], strides = [1, 1]} : vector<9x512xf32> to vector<1x512xf32>
    %54 = vector.broadcast %53 : vector<1x512xf32> to vector<4x512xf32>
    %55 = arith.mulf %52, %54 : vector<4x512xf32>
    %c32 = arith.constant 32 : index
    %c0_34 = arith.constant 0 : index
    %56 = vector.load %arg12[%c32, %c0_34] : memref<72x512xf32, #tpu.memory_space<vmem>>, vector<4x512xf32>
    tpu.vector_store %arg12[%c32, %c0_34], %55 {strides = array<i32>} : memref<72x512xf32, #tpu.memory_space<vmem>>, vector<4x512xf32>,
    %c0_35 = arith.constant 0 : index
    %c0_36 = arith.constant 0 : index
    %57 = vector.load %arg12[%c0_35, %c0_36] : memref<72x512xf32, #tpu.memory_space<vmem>>, vector<36x512xf32>
    %cst_37 = arith.constant dense<0.000000e+00> : vector<8x512xf32>
    %58 = tpu.matmul %10, %57, %cst_37 {dimension_numbers = #tpu.dot_dimension_numbers<[1], [0], [0], [1], [0, 0, 1, 1], [], []>} : vector<8x36xf32>, vector<36x512xf32>, vector<8x512xf32> -> vector<8x512xf32>
    %59 = vector.broadcast %11 : vector<8x1xf32> to vector<8x512xf32>
    %60 = arith.addf %58, %59 : vector<8x512xf32>
    %cst_38 = arith.constant dense<0.000000e+00> : vector<8xf32>
    %61 = vector.multi_reduction <add>, %60, %cst_38 [1] : vector<8x512xf32> to vector<8xf32>
    %62 = vector.shape_cast %61 : vector<8xf32> to vector<8x1xf32>
    %63 = arith.mulf %60, %60 : vector<8x512xf32>
    %cst_39 = arith.constant dense<0.000000e+00> : vector<8xf32>
    %64 = vector.multi_reduction <add>, %63, %cst_39 [1] : vector<8x512xf32> to vector<8xf32>
    %65 = vector.shape_cast %64 : vector<8xf32> to vector<8x1xf32>
    %cst_40 = arith.constant 0.001953125 : f32
    %66 = vector.broadcast %cst_40 : f32 to vector<8x1xf32>
    %67 = arith.mulf %62, %66 : vector<8x1xf32>
    %cst_41 = arith.constant 0.001953125 : f32
    %68 = vector.broadcast %cst_41 : f32 to vector<8x1xf32>
    %69 = arith.mulf %65, %68 : vector<8x1xf32>
    %70 = arith.mulf %67, %67 : vector<8x1xf32>
    %71 = arith.subf %69, %70 : vector<8x1xf32>
    %c0_42 = arith.constant 0 : index
    %c0_43 = arith.constant 0 : index
    %72 = vector.load %arg4[%c0_42, %c0_43] : memref<8x1xf32, #tpu.memory_space<vmem>>, vector<8x1xf32>
    %cst_44 = arith.constant 9.99999974E-6 : f32
    %73 = vector.broadcast %cst_44 : f32 to vector<8x1xf32>
    %74 = arith.addf %71, %73 : vector<8x1xf32>
    %75 = math.rsqrt %74 : vector<8x1xf32>
    %76 = arith.mulf %72, %75 : vector<8x1xf32>
    %c0_45 = arith.constant 0 : index
    %c0_46 = arith.constant 0 : index
    %77 = vector.load %arg5[%c0_45, %c0_46] : memref<8x1xf32, #tpu.memory_space<vmem>>, vector<8x1xf32>
    %78 = arith.mulf %67, %76 : vector<8x1xf32>
    %79 = arith.subf %77, %78 : vector<8x1xf32>
    %80 = vector.broadcast %76 : vector<8x1xf32> to vector<8x512xf32>
    %81 = arith.mulf %60, %80 : vector<8x512xf32>
    %82 = vector.broadcast %79 : vector<8x1xf32> to vector<8x512xf32>
    %83 = arith.addf %81, %82 : vector<8x512xf32>
    %cst_47 = arith.constant 0.000000e+00 : f32
    %84 = vector.broadcast %cst_47 : f32 to vector<8x512xf32>
    %85 = arith.maximumf %83, %84 : vector<8x512xf32>
    %86 = vector.extract_strided_slice %85 {offsets = [0, 0], sizes = [8, 256], strides = [1, 1]} : vector<8x512xf32> to vector<8x256xf32>
    %c0_48 = arith.constant 0 : index
    %c128_49 = arith.constant 128 : index
    %87 = vector.load %arg11[%c0_48, %c128_49] : memref<8x768xf32, #tpu.memory_space<vmem>>, vector<8x256xf32>
    tpu.vector_store %arg11[%c0_48, %c128_49], %86 {strides = array<i32>} : memref<8x768xf32, #tpu.memory_space<vmem>>, vector<8x256xf32>,
    %88 = vector.extract_strided_slice %85 {offsets = [0, 256], sizes = [8, 256], strides = [1, 1]} : vector<8x512xf32> to vector<8x256xf32>
    %c0_50 = arith.constant 0 : index
    %c384_51 = arith.constant 384 : index
    %89 = vector.load %arg11[%c0_50, %c384_51] : memref<8x768xf32, #tpu.memory_space<vmem>>, vector<8x256xf32>
    tpu.vector_store %arg11[%c0_50, %c384_51], %88 {strides = array<i32>} : memref<8x768xf32, #tpu.memory_space<vmem>>, vector<8x256xf32>,
    %c0_52 = arith.constant 0 : index
    %c0_53 = arith.constant 0 : index
    %90 = vector.load %arg6[%c0_52, %c0_53] : memref<8x72xf32, #tpu.memory_space<vmem>>, vector<8x72xf32>
    %c0_54 = arith.constant 0 : index
    %c0_55 = arith.constant 0 : index
    %91 = vector.load %arg7[%c0_54, %c0_55] : memref<8x1xf32, #tpu.memory_space<vmem>>, vector<8x1xf32>
    %c0_56 = arith.constant 0 : index
    %c111_57 = arith.constant 111 : index
    %92 = vector.load %arg11[%c0_56, %c111_57] : memref<8x768xf32, #tpu.memory_space<vmem>>, vector<8x512xf32>
    %93 = vector.extract_strided_slice %9 {offsets = [0, 0], sizes = [1, 512], strides = [1, 1]} : vector<9x512xf32> to vector<1x512xf32>
    %94 = vector.broadcast %93 : vector<1x512xf32> to vector<8x512xf32>
    %95 = arith.mulf %92, %94 : vector<8x512xf32>
    %c0_58 = arith.constant 0 : index
    %c0_59 = arith.constant 0 : index
    %96 = vector.load %arg12[%c0_58, %c0_59] : memref<72x512xf32, #tpu.memory_space<vmem>>, vector<8x512xf32>
    tpu.vector_store %arg12[%c0_58, %c0_59], %95 {strides = array<i32>} : memref<72x512xf32, #tpu.memory_space<vmem>>, vector<8x512xf32>,
    %c0_60 = arith.constant 0 : index
    %c112_61 = arith.constant 112 : index
    %97 = vector.load %arg11[%c0_60, %c112_61] : memref<8x768xf32, #tpu.memory_space<vmem>>, vector<8x512xf32>
    %98 = vector.extract_strided_slice %9 {offsets = [1, 0], sizes = [1, 512], strides = [1, 1]} : vector<9x512xf32> to vector<1x512xf32>
    %99 = vector.broadcast %98 : vector<1x512xf32> to vector<8x512xf32>
    %100 = arith.mulf %97, %99 : vector<8x512xf32>
    %c8_62 = arith.constant 8 : index
    %c0_63 = arith.constant 0 : index
    %101 = vector.load %arg12[%c8_62, %c0_63] : memref<72x512xf32, #tpu.memory_space<vmem>>, vector<8x512xf32>
    tpu.vector_store %arg12[%c8_62, %c0_63], %100 {strides = array<i32>} : memref<72x512xf32, #tpu.memory_space<vmem>>, vector<8x512xf32>,
    %c0_64 = arith.constant 0 : index
    %c113_65 = arith.constant 113 : index
    %102 = vector.load %arg11[%c0_64, %c113_65] : memref<8x768xf32, #tpu.memory_space<vmem>>, vector<8x512xf32>
    %103 = vector.extract_strided_slice %9 {offsets = [2, 0], sizes = [1, 512], strides = [1, 1]} : vector<9x512xf32> to vector<1x512xf32>
    %104 = vector.broadcast %103 : vector<1x512xf32> to vector<8x512xf32>
    %105 = arith.mulf %102, %104 : vector<8x512xf32>
    %c16_66 = arith.constant 16 : index
    %c0_67 = arith.constant 0 : index
    %106 = vector.load %arg12[%c16_66, %c0_67] : memref<72x512xf32, #tpu.memory_space<vmem>>, vector<8x512xf32>
    tpu.vector_store %arg12[%c16_66, %c0_67], %105 {strides = array<i32>} : memref<72x512xf32, #tpu.memory_space<vmem>>, vector<8x512xf32>,
    %c0_68 = arith.constant 0 : index
    %c127_69 = arith.constant 127 : index
    %107 = vector.load %arg11[%c0_68, %c127_69] : memref<8x768xf32, #tpu.memory_space<vmem>>, vector<8x512xf32>
    %108 = vector.extract_strided_slice %9 {offsets = [3, 0], sizes = [1, 512], strides = [1, 1]} : vector<9x512xf32> to vector<1x512xf32>
    %109 = vector.broadcast %108 : vector<1x512xf32> to vector<8x512xf32>
    %110 = arith.mulf %107, %109 : vector<8x512xf32>
    %c24_70 = arith.constant 24 : index
    %c0_71 = arith.constant 0 : index
    %111 = vector.load %arg12[%c24_70, %c0_71] : memref<72x512xf32, #tpu.memory_space<vmem>>, vector<8x512xf32>
    tpu.vector_store %arg12[%c24_70, %c0_71], %110 {strides = array<i32>} : memref<72x512xf32, #tpu.memory_space<vmem>>, vector<8x512xf32>,
    %c0_72 = arith.constant 0 : index
    %c128_73 = arith.constant 128 : index
    %112 = vector.load %arg11[%c0_72, %c128_73] : memref<8x768xf32, #tpu.memory_space<vmem>>, vector<8x512xf32>
    %113 = vector.extract_strided_slice %9 {offsets = [4, 0], sizes = [1, 512], strides = [1, 1]} : vector<9x512xf32> to vector<1x512xf32>
    %114 = vector.broadcast %113 : vector<1x512xf32> to vector<8x512xf32>
    %115 = arith.mulf %112, %114 : vector<8x512xf32>
    %c32_74 = arith.constant 32 : index
    %c0_75 = arith.constant 0 : index
    %116 = vector.load %arg12[%c32_74, %c0_75] : memref<72x512xf32, #tpu.memory_space<vmem>>, vector<8x512xf32>
    tpu.vector_store %arg12[%c32_74, %c0_75], %115 {strides = array<i32>} : memref<72x512xf32, #tpu.memory_space<vmem>>, vector<8x512xf32>,
    %c0_76 = arith.constant 0 : index
    %c129_77 = arith.constant 129 : index
    %117 = vector.load %arg11[%c0_76, %c129_77] : memref<8x768xf32, #tpu.memory_space<vmem>>, vector<8x512xf32>
    %118 = vector.extract_strided_slice %9 {offsets = [5, 0], sizes = [1, 512], strides = [1, 1]} : vector<9x512xf32> to vector<1x512xf32>
    %119 = vector.broadcast %118 : vector<1x512xf32> to vector<8x512xf32>
    %120 = arith.mulf %117, %119 : vector<8x512xf32>
    %c40 = arith.constant 40 : index
    %c0_78 = arith.constant 0 : index
    %121 = vector.load %arg12[%c40, %c0_78] : memref<72x512xf32, #tpu.memory_space<vmem>>, vector<8x512xf32>
    tpu.vector_store %arg12[%c40, %c0_78], %120 {strides = array<i32>} : memref<72x512xf32, #tpu.memory_space<vmem>>, vector<8x512xf32>,
    %c0_79 = arith.constant 0 : index
    %c143_80 = arith.constant 143 : index
    %122 = vector.load %arg11[%c0_79, %c143_80] : memref<8x768xf32, #tpu.memory_space<vmem>>, vector<8x512xf32>
    %123 = vector.extract_strided_slice %9 {offsets = [6, 0], sizes = [1, 512], strides = [1, 1]} : vector<9x512xf32> to vector<1x512xf32>
    %124 = vector.broadcast %123 : vector<1x512xf32> to vector<8x512xf32>
    %125 = arith.mulf %122, %124 : vector<8x512xf32>
    %c48 = arith.constant 48 : index
    %c0_81 = arith.constant 0 : index
    %126 = vector.load %arg12[%c48, %c0_81] : memref<72x512xf32, #tpu.memory_space<vmem>>, vector<8x512xf32>
    tpu.vector_store %arg12[%c48, %c0_81], %125 {strides = array<i32>} : memref<72x512xf32, #tpu.memory_space<vmem>>, vector<8x512xf32>,
    %c0_82 = arith.constant 0 : index
    %c144_83 = arith.constant 144 : index
    %127 = vector.load %arg11[%c0_82, %c144_83] : memref<8x768xf32, #tpu.memory_space<vmem>>, vector<8x512xf32>
    %128 = vector.extract_strided_slice %9 {offsets = [7, 0], sizes = [1, 512], strides = [1, 1]} : vector<9x512xf32> to vector<1x512xf32>
    %129 = vector.broadcast %128 : vector<1x512xf32> to vector<8x512xf32>
    %130 = arith.mulf %127, %129 : vector<8x512xf32>
    %c56 = arith.constant 56 : index
    %c0_84 = arith.constant 0 : index
    %131 = vector.load %arg12[%c56, %c0_84] : memref<72x512xf32, #tpu.memory_space<vmem>>, vector<8x512xf32>
    tpu.vector_store %arg12[%c56, %c0_84], %130 {strides = array<i32>} : memref<72x512xf32, #tpu.memory_space<vmem>>, vector<8x512xf32>,
    %c0_85 = arith.constant 0 : index
    %c145_86 = arith.constant 145 : index
    %132 = vector.load %arg11[%c0_85, %c145_86] : memref<8x768xf32, #tpu.memory_space<vmem>>, vector<8x512xf32>
    %133 = vector.extract_strided_slice %9 {offsets = [8, 0], sizes = [1, 512], strides = [1, 1]} : vector<9x512xf32> to vector<1x512xf32>
    %134 = vector.broadcast %133 : vector<1x512xf32> to vector<8x512xf32>
    %135 = arith.mulf %132, %134 : vector<8x512xf32>
    %c64 = arith.constant 64 : index
    %c0_87 = arith.constant 0 : index
    %136 = vector.load %arg12[%c64, %c0_87] : memref<72x512xf32, #tpu.memory_space<vmem>>, vector<8x512xf32>
    tpu.vector_store %arg12[%c64, %c0_87], %135 {strides = array<i32>} : memref<72x512xf32, #tpu.memory_space<vmem>>, vector<8x512xf32>,
    %c0_88 = arith.constant 0 : index
    %c0_89 = arith.constant 0 : index
    %137 = vector.load %arg12[%c0_88, %c0_89] : memref<72x512xf32, #tpu.memory_space<vmem>>, vector<72x512xf32>
    %cst_90 = arith.constant dense<0.000000e+00> : vector<8x512xf32>
    %138 = tpu.matmul %90, %137, %cst_90 {dimension_numbers = #tpu.dot_dimension_numbers<[1], [0], [0], [1], [0, 0, 1, 1], [], []>} : vector<8x72xf32>, vector<72x512xf32>, vector<8x512xf32> -> vector<8x512xf32>
    %139 = vector.broadcast %91 : vector<8x1xf32> to vector<8x512xf32>
    %140 = arith.addf %138, %139 : vector<8x512xf32>
    %cst_91 = arith.constant dense<0.000000e+00> : vector<8xf32>
    %141 = vector.multi_reduction <add>, %140, %cst_91 [1] : vector<8x512xf32> to vector<8xf32>
    %142 = vector.shape_cast %141 : vector<8xf32> to vector<8x1xf32>
    %143 = arith.mulf %140, %140 : vector<8x512xf32>
    %cst_92 = arith.constant dense<0.000000e+00> : vector<8xf32>
    %144 = vector.multi_reduction <add>, %143, %cst_92 [1] : vector<8x512xf32> to vector<8xf32>
    %145 = vector.shape_cast %144 : vector<8xf32> to vector<8x1xf32>
    %cst_93 = arith.constant 0.001953125 : f32
    %146 = vector.broadcast %cst_93 : f32 to vector<8x1xf32>
    %147 = arith.mulf %142, %146 : vector<8x1xf32>
    %cst_94 = arith.constant 0.001953125 : f32
    %148 = vector.broadcast %cst_94 : f32 to vector<8x1xf32>
    %149 = arith.mulf %145, %148 : vector<8x1xf32>
    %150 = arith.mulf %147, %147 : vector<8x1xf32>
    %151 = arith.subf %149, %150 : vector<8x1xf32>
    %c0_95 = arith.constant 0 : index
    %c0_96 = arith.constant 0 : index
    %152 = vector.load %arg8[%c0_95, %c0_96] : memref<8x1xf32, #tpu.memory_space<vmem>>, vector<8x1xf32>
    %cst_97 = arith.constant 9.99999974E-6 : f32
    %153 = vector.broadcast %cst_97 : f32 to vector<8x1xf32>
    %154 = arith.addf %151, %153 : vector<8x1xf32>
    %155 = math.rsqrt %154 : vector<8x1xf32>
    %156 = arith.mulf %152, %155 : vector<8x1xf32>
    %c0_98 = arith.constant 0 : index
    %c0_99 = arith.constant 0 : index
    %157 = vector.load %arg9[%c0_98, %c0_99] : memref<8x1xf32, #tpu.memory_space<vmem>>, vector<8x1xf32>
    %158 = arith.mulf %147, %156 : vector<8x1xf32>
    %159 = arith.subf %157, %158 : vector<8x1xf32>
    %160 = vector.broadcast %156 : vector<8x1xf32> to vector<8x512xf32>
    %161 = arith.mulf %140, %160 : vector<8x512xf32>
    %162 = vector.broadcast %159 : vector<8x1xf32> to vector<8x512xf32>
    %163 = arith.addf %161, %162 : vector<8x512xf32>
    %164 = arith.addf %163, %60 : vector<8x512xf32>
    %cst_100 = arith.constant 0.000000e+00 : f32
    %165 = vector.broadcast %cst_100 : f32 to vector<8x512xf32>
    %166 = arith.maximumf %164, %165 : vector<8x512xf32>
    %167 = vector.extract_strided_slice %166 {offsets = [0, 0], sizes = [8, 256], strides = [1, 1]} : vector<8x512xf32> to vector<8x256xf32>
    %c0_101 = arith.constant 0 : index
    %c0_102 = arith.constant 0 : index
    %c0_103 = arith.constant 0 : index
    %168 = vector.load %arg10[%c0_101, %c0_102, %c0_103] : memref<2x8x256xf32, #tpu.memory_space<vmem>>, vector<1x8x256xf32>
    %169 = vector.shape_cast %168 : vector<1x8x256xf32> to vector<8x256xf32>
    %170 = vector.shape_cast %167 : vector<8x256xf32> to vector<1x8x256xf32>
    tpu.vector_store %arg10[%c0_101, %c0_102, %c0_103], %170 {strides = array<i32>} : memref<2x8x256xf32, #tpu.memory_space<vmem>>, vector<1x8x256xf32>,
    %171 = vector.extract_strided_slice %166 {offsets = [0, 256], sizes = [8, 256], strides = [1, 1]} : vector<8x512xf32> to vector<8x256xf32>
    %c1_104 = arith.constant 1 : index
    %c0_105 = arith.constant 0 : index
    %c0_106 = arith.constant 0 : index
    %172 = vector.load %arg10[%c1_104, %c0_105, %c0_106] : memref<2x8x256xf32, #tpu.memory_space<vmem>>, vector<1x8x256xf32>
    %173 = vector.shape_cast %172 : vector<1x8x256xf32> to vector<8x256xf32>
    %174 = vector.shape_cast %171 : vector<8x256xf32> to vector<1x8x256xf32>
    tpu.vector_store %arg10[%c1_104, %c0_105, %c0_106], %174 {strides = array<i32>} : memref<2x8x256xf32, #tpu.memory_space<vmem>>, vector<1x8x256xf32>,
    return
  }
}

</mosaic_0001>

<bundles_post_ra>
// kernel: conv_block_nested.1
= control target key start
LH: loop header
LB: loop body
LE: loop exit
PB: predicated region body
PF: predicated region fallthrough
CT: control target
= control target key end

     0   :  { %v65_v0 = vlaneseq  ;;  %s1525_s17 = smov 17   ;;  %s1526_s30 = smov 16   ;;  %v2262_v26 = vmov 0.0   ;;  %vm122_vm0 = vcmask 138240   ;;  %vm277_vm1 = vcmask 121856   ;;  %s2251_s1 = inlined_call_operand.vmem [shape: f32[9,512], index: 1, kind: input, shape index: {}]   ;;  %s2252_s0 = inlined_call_operand.vmem [shape: f32[2,4,256], index: 0, kind: input, shape index: {}]   ;;  %s2253_s3 = inlined_call_operand.vmem [shape: f32[8,1], index: 3, kind: input, shape index: {}]   ;;  %s2254_s2 = inlined_call_operand.vmem [shape: f32[8,36], index: 2, kind: input, shape index: {}]   ;;  %s2255_s4 = inlined_call_operand.vmem [shape: f32[8,1], index: 4, kind: input, shape index: {}]   ;;  %s2256_s5 = inlined_call_operand.vmem [shape: f32[8,1], index: 5, kind: input, shape index: {}]   ;;  %s2257_s7 = inlined_call_operand.vmem [shape: f32[8,1], index: 7, kind: input, shape index: {}]   ;;  %s2258_s6 = inlined_call_operand.vmem [shape: f32[8,72], index: 6, kind: input, shape index: {}]   ;;  %s2259_s8 = inlined_call_operand.vmem [shape: f32[8,1], index: 8, kind: input, shape index: {}]   ;;  %s2260_s9 = inlined_call_operand.vmem [shape: f32[8,1], index: 9, kind: input, shape index: {}]   ;;  %s2261_s10 = inlined_call_operand.vmem [shape: f32[2,8,256], index: 10, kind: output, shape index: {}]  }
   0x1   :  { %v1493_v1 = vld [vmem:[%s2251_s1 + $0x20] ss:$0 sm:$0xff]  ;;  %v1494_v2 = vld [vmem:[%s2251_s1 + $0x28] ss:$0 sm:$0xff]  ;;  %v1495_v4 = vld [vmem:[%s2251_s1 + $0x30] ss:$0 sm:$0xff]  ;;  %806 = vmatprep.mubr.f32.mxu0 %v2262_v26  ;;  %877 = vmatprep.mubr.f32.mxu1 %v2262_v26 }
   0x2   :  { %652 = vrot.lane.b32.xlu1 %v1493_v1, %s1525_s17  ;;  %654 = vrot.lane.b32.xlu0 %v1494_v2, %s1525_s17  ;;  %v1598_v3 = vshrl.u32 %v65_v0, 7  ;;  %v1606_v5 = vld [vmem:[%s2251_s1] sm:$0xff]  ;;  %v1611_v6 = vld [vmem:[%s2251_s1 + $0x10] sm:$0xff]  ;;  %s1527_s12 = smov 1   ;;  %36 = vst [vmem:[#allocation2 + $0x8] sm:$0xff] %v2262_v26  ;;  %35 = vst [vmem:[#allocation2 + $0x20] sm:$0xff] %v2262_v26 }
   0x3   :  { %v1618_v9 = vld [vmem:[%s2251_s1 + $0x8] sm:$0xff]  ;;  %v37_v12 = vld [vmem:[%s2252_s0] sm:$0xff]  ;;  %v1646_v19 = vld [vmem:[%s2251_s1 + $0x18] sm:$0xff]  ;;  %s1529_s13 = smov 15   ;;  %s1530_s14 = smov 127   ;;  %vm248_vm2 = vcmask 924672  }
   0x4   :  { %v376_v7 = vsub.s32 4, %v1598_v3  ;;  %v556_v8 = vsub.s32 7, %v1598_v3  ;;  %v1621_v10 = vsub.s32 5, %v1598_v3  ;;  %v1492_v11 = vld [vmem:[%s2252_s0 + $0x8] sm:$0xff]  ;;  %41 = vst [vmem:[#allocation2 + $0x28] sm:$0xf] %v37_v12  ;;  %v39_v27 = vcombine.high %v37_v12, %v37_v12 }
   0x5   :  { %48 = vst [vmem:[#allocation2 + $0x10] sm:$0xf] %v1492_v11  ;;  %v483_v22 = vsub.s32 6, %v1598_v3  ;;  %v46_v25 = vcombine.high %v1492_v11, %v1492_v11  ;;  %v297_v30 = vsub.s32 3, %v1598_v3  ;;  %v142_v35 = vsub.s32 1, %v1598_v3  ;;  %s1531_s18 = smov 112  }
   0x6   :  { %656 = vrot.lane.b32.xlu1 %v1495_v4, %s1525_s17  ;;  %v557_v13 = vrot.slane %v1606_v5, %v556_v8  ;;  %v1632_v14 = vrot.slane %v1606_v5, %v376_v7  ;;  %v565_v15 = vrot.slane %v1611_v6, %v556_v8  ;;  %v1636_v16 = vrot.slane %v1611_v6, %v376_v7  ;;  %v1496_v38 = vld [vmem:[%s2251_s1 + $0x38] ss:$0 sm:$0xff]  ;;  %s1532_s1 = smov 113   ;;  %s1533_s19 = smov 111  }
   0x7   :  { %v1639_v17 = vrot.slane %v1618_v9, %v376_v7  ;;  %v561_v18 = vrot.slane %v1618_v9, %v556_v8  ;;  %v1649_v20 = vrot.slane %v1646_v19, %v376_v7  ;;  %v410_v21 = vrot.slane %v1618_v9, %v1621_v10  ;;  %49 = vst [vmem:[#allocation2 + $0x18] sm:$0xf] %v46_v25 }
   0x8   :  { %574 = vrot.lane.b32.xlu0 %v557_v13, %s1526_s30  ;;  %v406_v23 = vrot.slane %v1606_v5, %v1621_v10  ;;  %v484_v24 = vrot.slane %v1606_v5, %v483_v22  ;;  %v414_v28 = vrot.slane %v1611_v6, %v1621_v10  ;;  %42 = vst [vmem:[#allocation2] sm:$0xf] %v39_v27  ;;  %v222_v40 = vsub.s32 2, %v1598_v3 }
   0x9   :  { %v492_v29 = vrot.slane %v1611_v6, %v483_v22  ;;  %v488_v31 = vrot.slane %v1618_v9, %v483_v22  ;;  %v302_v32 = vrot.slane %v1618_v9, %v297_v30  ;;  %v298_v33 = vrot.slane %v1606_v5, %v297_v30  ;;  %v631_v13 = vld [vmem:[#allocation2 + $0x8] sm:$0xf] }
   0xa   :  { %578 = vrot.lane.b32.xlu1 %v565_v15, %s1526_s30  ;;  %v569_v34 = vrot.slane %v1646_v19, %v556_v8  ;;  %v306_v36 = vrot.slane %v1611_v6, %v297_v30  ;;  %v143_v37 = vrot.slane %v1606_v5, %v142_v35  ;;  %v151_v39 = vrot.slane %v1611_v6, %v142_v35 }
   0xb   :  { %v147_v41 = vrot.slane %v1618_v9, %v142_v35  ;;  %v227_v42 = vrot.slane %v1618_v9, %v222_v40  ;;  %v223_v43 = vrot.slane %v1606_v5, %v222_v40  ;;  %v418_v44 = vrot.slane %v1646_v19, %v1621_v10  ;;  %v627_v55 = vld [vmem:[#allocation2 + $0x28] sm:$0xf] }
   0xc   :  { %576 = vrot.lane.b32.xlu0 %v561_v18, %s1526_s30  ;;  %v67_v45 = vsub.s32 0, %v1598_v3  ;;  %v231_v46 = vrot.slane %v1611_v6, %v222_v40  ;;  %v496_v48 = vrot.slane %v1646_v19, %v483_v22  ;;  %v155_v51 = vrot.slane %v1646_v19, %v142_v35  ;;  %v629_v59 = vld [vmem:[#allocation2 + $0x10] sm:$0xf]  ;;  %v476_v27 = vld [vmem:[#allocation2 + $0x28] sm:$0xf] }
   0xd   :  { %v310_v52 = vrot.slane %v1646_v19, %v297_v30  ;;  %v235_v54 = vrot.slane %v1646_v19, %v222_v40  ;;  %vm93_vm3 = vcmask 908288   ;;  %vm202_vm4 = vcmask 130048  }
   0xe   :  { %425 = vrot.lane.b32.xlu1 %v410_v21, %s1527_s12  ;;  %v68_v47 = vrot.slane %v1606_v5, %v67_v45  ;;  %v76_v49 = vrot.slane %v1611_v6, %v67_v45  ;;  %v72_v50 = vrot.slane %v1618_v9, %v67_v45  ;;  %v80_v53 = vrot.slane %v1646_v19, %v67_v45  ;;  %v630_v15 = vld [vmem:[#allocation2 + $0x18] sm:$0xf] }
   0xf   :  { %v628_v25 = vld [vmem:[#allocation2] sm:$0xf]  ;;  %vm357_vm5 = vcmask 7168   ;;  %vm323_vm6 = vcmask 1039360   ;;  %vm168_vm7 = vcmask 916480   ;;  %vm729_vm8 = vcmask 1043456  }
  0x10   :  { %423 = vrot.lane.b32.xlu0 %v406_v23, %s1527_s12  ;;  %vm725_vm9 = vcmask 293888   ;;  %vm1286_vm10 = vcmask 588800  }
  0x12   :  { %501 = vrot.lane.b32.xlu1 %v484_v24, %s1529_s13 }
  0x14   :  { %427 = vrot.lane.b32.xlu0 %v414_v28, %s1527_s12 }
  0x16   :  { %505 = vrot.lane.b32.xlu1 %v492_v29, %s1529_s13 }
  0x18   :  { %503 = vrot.lane.b32.xlu0 %v488_v31, %s1529_s13 }
  0x1a   :  { %317 = vrot.lane.b32.xlu1 %v302_v32, %s1530_s14  ;;  %v215_v32 = vld [vmem:[#allocation2 + $0x20] sm:$0xf] }
  0x1c   :  { %315 = vrot.lane.b32.xlu0 %v298_v33, %s1530_s14 }
  0x1e   :  { %580 = vrot.lane.b32.xlu1 %v569_v34, %s1526_s30 }
  0x20   :  { %319 = vrot.lane.b32.xlu0 %v306_v36, %s1530_s14 }
  0x22   :  { %160 = vrot.lane.b32.xlu1 %v143_v37, %s1531_s18  ;;  %v60_v37 = vld [vmem:[#allocation2 + $0x20] sm:$0xf] }
  0x24   :  { %658 = vrot.lane.b32.xlu0 %v1496_v38, %s1525_s17 }
  0x26   :  { %164 = vrot.lane.b32.xlu1 %v151_v39, %s1531_s18  ;;  %v480_v39 = vld [vmem:[#allocation2 + $0x8] sm:$0xf] }
  0x28   :  { %162 = vrot.lane.b32.xlu0 %v147_v41, %s1531_s18 }
  0x2a   :  { %242 = vrot.lane.b32.xlu1 %v227_v42, %s1532_s1 }
  0x2c   :  { %240 = vrot.lane.b32.xlu0 %v223_v43, %s1532_s1  ;;  %v478_v43 = vld [vmem:[#allocation2 + $0x10] sm:$0xf] }
  0x2e   :  { %429 = vrot.lane.b32.xlu1 %v418_v44, %s1527_s12 }
  0x30   :  { %244 = vrot.lane.b32.xlu0 %v231_v46, %s1532_s1 }
  0x32   :  { %85 = vrot.lane.b32.xlu1 %v68_v47, %s1533_s19  ;;  %v216_v47 = vld [vmem:[#allocation2 + $0x28] sm:$0xf] }
  0x34   :  { %507 = vrot.lane.b32.xlu0 %v496_v48, %s1529_s13 }
  0x36   :  { %89 = vrot.lane.b32.xlu1 %v76_v49, %s1533_s19 }
  0x38   :  { %87 = vrot.lane.b32.xlu0 %v72_v50, %s1533_s19 }
  0x3a   :  { %166 = vrot.lane.b32.xlu1 %v155_v51, %s1531_s18 }
  0x3c   :  { %321 = vrot.lane.b32.xlu0 %v310_v52, %s1530_s14  ;;  %v479_v52 = vld [vmem:[#allocation2 + $0x18] sm:$0xf] }
  0x3e   :  { %91 = vrot.lane.b32.xlu1 %v80_v53, %s1533_s19  ;;  %v219_v53 = vld [vmem:[#allocation2 + $0x18] sm:$0xf] }
  0x40   :  { %246 = vrot.lane.b32.xlu0 %v235_v54, %s1532_s1 }
  0x74   :  { %v1720_v56 = vpop.permute.xlu1 %652  ;;  %v655_v57 = vpop.permute.xlu0 %654 }
  0x75   :  { %v668_v58 = vmul.f32 %v1720_v56, %v627_v55  ;;  %v1762_v22 = vsel %vm122_vm0, %v1720_v56, %v655_v57  ;;  %v61_v55 = vld [vmem:[#allocation2 + $0x28] sm:$0xf] }
  0x76   :  { %v669_v29 = vmul.f32 %v1762_v22, %v628_v25 }
  0x77   :  { %678 = vrot.lane.b32.xlu0 %v668_v58, %s1533_s19 }
  0x78   :  { %v657_v60 = vpop.permute.xlu1 %656 }
  0x79   :  { %v1725_v61 = vsel %vm122_vm0, %v655_v57, %v657_v60 }
  0x7a   :  { %v1727_v62 = vpop.permute.xlu0 %574  ;;  %v670_v63 = vmul.f32 %v1725_v61, %v629_v59 }
  0x7c   :  { %v1730_v0 = vpop.permute.xlu1 %578  ;;  %682 = vrot.lane.b32.xlu1 %v670_v63, %s1533_s19  ;;  %v477_v63 = vld [vmem:[#allocation2] sm:$0xf] }
  0x7e   :  { %v1733_v1 = vpop.permute.xlu0 %576 }
  0x80   :  { %v1735_v2 = vpop.permute.xlu1 %425 }
  0x82   :  { %v1737_v3 = vpop.permute.xlu0 %423 }
  0x84   :  { %v1739_v4 = vpop.permute.xlu1 %501 }
  0x85   :  { %v517_v31 = vmul.f32 %v1739_v4, %v476_v27 }
  0x86   :  { %v1741_v5 = vpop.permute.xlu0 %427 }
  0x88   :  { %v506_v6 = vpop.permute.xlu1 %505 }
  0x8a   :  { %v504_v7 = vpop.permute.xlu0 %503 }
  0x8b   :  { %v1785_v41 = vsel %vm277_vm1, %v504_v7, %v506_v6 }
  0x8c   :  { %v1743_v8 = vpop.permute.xlu1 %317  ;;  %v519_v45 = vmul.f32 %v1785_v41, %v478_v43 }
  0x8e   :  { %v1745_v9 = vpop.permute.xlu0 %315 }
  0x90   :  { %v1747_v10 = vpop.permute.xlu1 %580 }
  0x92   :  { %v1749_v11 = vpop.permute.xlu0 %319 }
  0x94   :  { %v1751_v12 = vpop.permute.xlu1 %160 }
  0x96   :  { %v1753_v18 = vpop.permute.xlu0 %658 }
  0x97   :  { %v672_v19 = vmul.f32 %v1753_v18, %v631_v13  ;;  %v1758_v21 = vsel %vm122_vm0, %v657_v60, %v1753_v18  ;;  %v1817_v60 = vsel %vm277_vm1, %v1739_v4, %v504_v7  ;;  %v217_v7 = vld [vmem:[#allocation2] sm:$0xf] }
  0x98   :  { %v1764_v23 = vpop.permute.xlu1 %164  ;;  %v671_v24 = vmul.f32 %v1758_v21, %v630_v15  ;;  %v218_v15 = vld [vmem:[#allocation2 + $0x10] sm:$0xf] }
  0x99   :  { %686 = vrot.lane.b32.xlu0 %v672_v19, %s1533_s19  ;;  %v549_v19 = vld [vmem:[#allocation2 + $0x28] sm:$0xf] }
  0x9a   :  { %v1768_v28 = vpop.permute.xlu0 %162  ;;  %684 = vrot.lane.b32.xlu1 %v671_v24, %s1533_s19  ;;  %v518_v24 = vmul.f32 %v1817_v60, %v477_v63 }
  0x9c   :  { %v243_v30 = vpop.permute.xlu1 %242 }
  0x9d   :  { %680 = vrot.lane.b32.xlu0 %v669_v29, %s1533_s19  ;;  %v590_v29 = vmul.f32 %v1727_v62, %v549_v19 }
  0x9e   :  { %v1774_v33 = vpop.permute.xlu0 %240  ;;  %527 = vrot.lane.b32.xlu1 %v517_v31, %s1532_s1  ;;  %v1836_v31 = vsel %vm202_vm4, %v1733_v1, %v1730_v0 }
  0x9f   :  { %v257_v34 = vmul.f32 %v1774_v33, %v215_v32  ;;  %v1795_v48 = vsel %vm248_vm2, %v1774_v33, %v243_v30  ;;  %v551_v32 = vld [vmem:[#allocation2 + $0x10] sm:$0xf] }
  0xa0   :  { %v1778_v35 = vpop.permute.xlu1 %429  ;;  %v258_v49 = vmul.f32 %v1795_v48, %v216_v47  ;;  %v592_v43 = vmul.f32 %v1836_v31, %v551_v32  ;;  %v402_v32 = vld [vmem:[#allocation2 + $0x8] sm:$0xf] }
  0xa1   :  { %267 = vrot.lane.b32.xlu0 %v257_v34, %s1529_s13 }
  0xa2   :  { %v245_v36 = vpop.permute.xlu0 %244 }
  0xa3   :  { %v1828_v25 = vsel %vm248_vm2, %v243_v30, %v245_v36 }
  0xa4   :  { %v1781_v38 = vpop.permute.xlu1 %85  ;;  %v259_v30 = vmul.f32 %v1828_v25, %v217_v7  ;;  %v1870_v7 = vsel %vm202_vm4, %v1730_v0, %v1747_v10  ;;  %v1881_v0 = vsel %vm168_vm7, %v1751_v12, %v1768_v28 }
  0xa5   :  { %v102_v40 = vmul.f32 %v1781_v38, %v60_v37 }
  0xa6   :  { %v1787_v42 = vpop.permute.xlu0 %507 }
  0xa7   :  { %v521_v44 = vmul.f32 %v1787_v42, %v480_v39  ;;  %112 = vrot.lane.b32.xlu0 %v102_v40, %s1525_s17  ;;  %v1801_v50 = vsel %vm277_vm1, %v506_v6, %v1787_v42  ;;  %v398_v39 = vld [vmem:[#allocation2 + $0x28] sm:$0xf]  ;;  %v600_v40 = vrot.slane %v590_v29, 4 }
  0xa8   :  { %v520_v54 = vmul.f32 %v1801_v50, %v479_v52  ;;  %v1838_v34 = vpop.permute.xlu1 %89  ;;  %v602_v52 = vrot.slane %v592_v43, 4 }
  0xa9   :  { %535 = vrot.lane.b32.xlu1 %v521_v44, %s1532_s1  ;;  %v1851_v44 = vsel %vm357_vm5, %v1735_v2, %v1741_v5 }
  0xaa   :  { %v88_v46 = vpop.permute.xlu0 %87 }
  0xab   :  { %531 = vrot.lane.b32.xlu0 %v519_v45, %s1532_s1  ;;  %v1809_v57 = vsel %vm93_vm3, %v1781_v38, %v88_v46  ;;  %v1844_v37 = vsel %vm93_vm3, %v88_v46, %v1838_v34  ;;  %v400_v45 = vld [vmem:[#allocation2 + $0x10] sm:$0xf]  ;;  %v439_v46 = vmul.f32 %v1737_v3, %v398_v39 }
  0xac   :  { %v103_v6 = vmul.f32 %v1809_v57, %v61_v55  ;;  %v1861_v55 = vsel %vm323_vm6, %v1745_v9, %v1743_v8 }
  0xae   :  { %v1803_v51 = vpop.permute.xlu0 %321 }
  0xaf   :  { %269 = vrot.lane.b32.xlu0 %v258_v49, %s1529_s13  ;;  %v553_v49 = vld [vmem:[#allocation2 + $0x8] sm:$0xf] }
  0xb0   :  { %v594_v63 = vmul.f32 %v1747_v10, %v553_v49  ;;  %v443_v49 = vmul.f32 %v1778_v35, %v402_v32  ;;  %v1899_v32 = vsel %vm202_vm4, %v1727_v62, %v1733_v1 }
  0xb2   :  { %v1811_v58 = vpop.permute.xlu0 %246 }
  0xb3   :  { %v261_v59 = vmul.f32 %v1811_v58, %v219_v53  ;;  %533 = vrot.lane.b32.xlu0 %v520_v54, %s1532_s1  ;;  %v1823_v13 = vsel %vm248_vm2, %v245_v36, %v1811_v58  ;;  %v62_v36 = vld [vmem:[#allocation2] sm:$0xf]  ;;  %v441_v53 = vmul.f32 %v1851_v44, %v400_v45  ;;  %v291_v54 = vld [vmem:[#allocation2 + $0x28] sm:$0xf] }
  0xb4   :  { %v260_v27 = vmul.f32 %v1823_v13, %v218_v15  ;;  %v104_v47 = vmul.f32 %v1844_v37, %v62_v36  ;;  %v333_v19 = vmul.f32 %v1861_v55, %v291_v54  ;;  %v372_v36 = vld [vmem:[#allocation2 + $0x10] sm:$0xf] }
  0xb5   :  { %275 = vrot.lane.b32.xlu1 %v261_v59, %s1529_s13  ;;  %v449_v59 = vrot.slane %v439_v46, 4  ;;  %v451_v15 = vrot.slane %v441_v53, 4  ;;  %v392_v45 = vmul.f32 %v1636_v16, %v372_v36 }
  0xb6   :  { %v343_v39 = vrot.slane %v333_v19, 4  ;;  %v453_v19 = vrot.slane %v443_v49, 4 }
  0xb7   :  { %114 = vrot.lane.b32.xlu0 %v103_v6, %s1525_s17  ;;  %v290_v6 = vld [vmem:[#allocation2 + $0x20] sm:$0xf]  ;;  %396 = vst [vmem:[#allocation3 + $0x50] sm:$0xf] %v392_v45 }
  0xb8   :  { %v332_v29 = vmul.f32 %v1745_v9, %v290_v6  ;;  %v371_v6 = vld [vmem:[#allocation2] sm:$0xf] }
  0xb9   :  { %529 = vrot.lane.b32.xlu1 %v518_v24, %s1532_s1  ;;  %v552_v24 = vld [vmem:[#allocation2 + $0x18] sm:$0xf] }
  0xba   :  { %v342_v46 = vrot.slane %v332_v29, 4 }
  0xbb   :  { %273 = vrot.lane.b32.xlu0 %v260_v27, %s1529_s13  ;;  %v604_v27 = vrot.slane %v594_v63, 4  ;;  %v1890_v63 = vsel %vm357_vm5, %v1741_v5, %v1778_v35 }
  0xbd   :  { %271 = vrot.lane.b32.xlu1 %v259_v30, %s1529_s13  ;;  %v373_v30 = vld [vmem:[#allocation2 + $0x18] sm:$0xf] }
  0xbe   :  { %v393_v43 = vmul.f32 %v1649_v20, %v373_v30  ;;  %v550_v30 = vld [vmem:[#allocation2] sm:$0xf] }
  0xbf   :  { %605 = vrot.lane.b32.xlu0 %v600_v40, %s1531_s18  ;;  %v593_v40 = vmul.f32 %v1870_v7, %v552_v24  ;;  %v591_v45 = vmul.f32 %v1899_v32, %v550_v30  ;;  %v1944_v30 = vsel %vm168_vm7, %v1768_v28, %v1764_v23  ;;  %v64_v28 = vld [vmem:[#allocation2 + $0x18] sm:$0xf] }
  0xc0   :  { %397 = vst [vmem:[#allocation3] sm:$0xf] %v393_v43  ;;  %v1908_v43 = vpop.permute.xlu1 %166 }
  0xc1   :  { %116 = vrot.lane.b32.xlu1 %v104_v47, %s1525_s17  ;;  %v136_v47 = vld [vmem:[#allocation2 + $0x28] sm:$0xf]  ;;  %v603_v53 = vrot.slane %v593_v40, 4  ;;  %v293_v40 = vld [vmem:[#allocation2 + $0x10] sm:$0xf] }
  0xc2   :  { %v178_v54 = vmul.f32 %v1881_v0, %v136_v47  ;;  %v399_v47 = vld [vmem:[#allocation2] sm:$0xf] }
  0xc3   :  { %609 = vrot.lane.b32.xlu0 %v602_v52, %s1531_s18  ;;  %v135_v52 = vld [vmem:[#allocation2 + $0x20] sm:$0xf] }
  0xc4   :  { %v177_v24 = vmul.f32 %v1751_v12, %v135_v52  ;;  %v188_v5 = vrot.slane %v178_v54, 4  ;;  %v601_v54 = vrot.slane %v591_v45, 4  ;;  %v294_v45 = vld [vmem:[#allocation2 + $0x18] sm:$0xf] }
  0xc5   :  { %454 = vrot.lane.b32.xlu1 %v449_v59, %s1530_s14  ;;  %v401_v59 = vld [vmem:[#allocation2 + $0x18] sm:$0xf] }
  0xc6   :  { %v442_v36 = vmul.f32 %v1890_v63, %v401_v59  ;;  %v187_v1 = vrot.slane %v177_v24, 4 }
  0xc7   :  { %458 = vrot.lane.b32.xlu0 %v451_v15, %s1530_s14  ;;  %v370_v15 = vld [vmem:[#allocation2 + $0x28] sm:$0xf] }
  0xc8   :  { %v390_v29 = vmul.f32 %v1632_v14, %v370_v15  ;;  %v452_v49 = vrot.slane %v442_v36, 4  ;;  %v292_v15 = vld [vmem:[#allocation2] sm:$0xf] }
  0xc9   :  { %613 = vrot.lane.b32.xlu1 %v604_v27, %s1531_s18  ;;  %v391_v27 = vmul.f32 %v1639_v17, %v371_v6  ;;  %v1926_v6 = vsel %vm323_vm6, %v1743_v8, %v1749_v11 }
  0xca   :  { %394 = vst [vmem:[#allocation3 + $0x28] sm:$0xf] %v390_v29  ;;  %v138_v29 = vld [vmem:[#allocation2 + $0x10] sm:$0xf] }
  0xcb   :  { %349 = vrot.lane.b32.xlu0 %v343_v39, %s1527_s12  ;;  %395 = vst [vmem:[#allocation3 + $0xa8] sm:$0xf] %v391_v27  ;;  %v1906_v39 = vsel %vm323_vm6, %v1749_v11, %v1803_v51  ;;  %v63_v27 = vld [vmem:[#allocation2 + $0x10] sm:$0xf]  ;;  %v334_v11 = vmul.f32 %v1926_v6, %v292_v15 }
  0xcc   :  { %v335_v52 = vmul.f32 %v1906_v39, %v293_v40 }
  0xcd   :  { %347 = vrot.lane.b32.xlu1 %v342_v46, %s1527_s12  ;;  %v1915_v46 = vsel %vm357_vm5, %v1737_v3, %v1735_v2  ;;  %v344_v40 = vrot.slane %v334_v11, 4 }
  0xce   :  { %v440_v59 = vmul.f32 %v1915_v46, %v399_v47  ;;  %v345_v2 = vrot.slane %v335_v52, 4 }
  0xcf   :  { %611 = vrot.lane.b32.xlu0 %v603_v53, %s1531_s18  ;;  %v1919_v53 = vpop.permute.xlu1 %91 }
  0xd0   :  { %v1937_v24 = vsel %vm93_vm3, %v1838_v34, %v1919_v53  ;;  %v450_v8 = vrot.slane %v440_v59, 4  ;;  %v106_v59 = vmul.f32 %v1919_v53, %v64_v28 }
  0xd1   :  { %462 = vrot.lane.b32.xlu1 %v453_v19, %s1530_s14  ;;  %v1932_v19 = vsel %vm168_vm7, %v1764_v23, %v1908_v43  ;;  %v105_v36 = vmul.f32 %v1937_v24, %v63_v27  ;;  %v1534_v27 = vmov 0  }
  0xd2   :  { %v180_v34 = vmul.f32 %v1932_v19, %v138_v29  ;;  %1517 = vset.pattern.permute.xlu0 %v1534_v27  ;;  %v59_v29 = vld [vmem:[%s2253_s3] sm:$0xff]  ;;  %1518 = vset.pattern.permute.xlu1 %v1534_v27 }
  0xd3   :  { %194 = vrot.lane.b32.xlu0 %v188_v5, %s1526_s30  ;;  %v137_v5 = vld [vmem:[#allocation2] sm:$0xf] }
  0xd4   :  { %v190_v47 = vrot.slane %v180_v34, 4 }
  0xd5   :  { %192 = vrot.lane.b32.xlu1 %v187_v1, %s1526_s30  ;;  %v179_v1 = vmul.f32 %v1944_v30, %v137_v5 }
  0xd7   :  { %460 = vrot.lane.b32.xlu0 %v452_v49, %s1530_s14  ;;  %v336_v49 = vmul.f32 %v1803_v51, %v294_v45  ;;  %v189_v23 = vrot.slane %v179_v1, 4 }
  0xd9   :  { %607 = vrot.lane.b32.xlu1 %v601_v54, %s1531_s18  ;;  %v346_v52 = vrot.slane %v336_v49, 4  ;;  %v139_v54 = vld [vmem:[#allocation2 + $0x18] sm:$0xf] }
  0xda   :  { %v181_v15 = vmul.f32 %v1908_v43, %v139_v54 }
  0xdb   :  { %353 = vrot.lane.b32.xlu0 %v345_v2, %s1527_s12 }
  0xdc   :  { %v191_v2 = vrot.slane %v181_v15, 4 }
  0xdd   :  { %456 = vrot.lane.b32.xlu1 %v450_v8, %s1530_s14 }
  0xdf   :  { %118 = vrot.lane.b32.xlu0 %v105_v36, %s1525_s17 }
  0xe1   :  { %351 = vrot.lane.b32.xlu1 %v344_v40, %s1527_s12 }
  0xe3   :  { %198 = vrot.lane.b32.xlu0 %v190_v47, %s1526_s30 }
  0xe5   :  { %196 = vrot.lane.b32.xlu1 %v189_v23, %s1526_s30 }
  0xe7   :  { %722 = vperm.xlu0 %1517, %v59_v29  }
  0xe9   :  { %355 = vrot.lane.b32.xlu1 %v346_v52, %s1527_s12  ;;  %v679_v8 = vpop.permute.xlu0 %678 }
  0xed   :  { %120 = vrot.lane.b32.xlu1 %v106_v59, %s1525_s17 }
  0xee   :  { %v683_v11 = vpop.permute.xlu1 %682 }
  0xf1   :  { %200 = vrot.lane.b32.xlu1 %v191_v2, %s1526_s30 }
 0x10b   :  { %v687_v5 = vpop.permute.xlu0 %686 }
 0x10c   :  { %v685_v36 = vpop.permute.xlu1 %684 }
 0x10d   :  { %v690_v34 = vsel %vm93_vm3, %v683_v11, %v685_v36  ;;  %v691_v40 = vsel %vm93_vm3, %v685_v36, %v687_v5 }
 0x10e   :  { %698 = vst [vmem:[#allocation3 + $0xc0] sm:$0xf] %v690_v34  ;;  %699 = vst [vmem:[#allocation3 + $0x68] sm:$0xf] %v691_v40 }
 0x10f   :  { %v681_v1 = vpop.permute.xlu0 %680 }
 0x110   :  { %v688_v45 = vsel %vm93_vm3, %v679_v8, %v681_v1  ;;  %v689_v47 = vsel %vm93_vm3, %v681_v1, %v683_v11  ;;  %v528_v2 = vpop.permute.xlu1 %527 }
 0x111   :  { %696 = vst [vmem:[#allocation3 + $0x88] sm:$0xf] %v688_v45  ;;  %697 = vst [vmem:[#allocation3 + $0x70] sm:$0xf] %v689_v47 }
 0x113   :  { %v268_v49 = vpop.permute.xlu0 %267 }
 0x115   :  { %v719_v23 = vld [vmem:[#allocation3 + $0x68] sm:$0xf]  ;;  %v718_v28 = vld [vmem:[#allocation3 + $0xc0] sm:$0xf] }
 0x116   :  { %1500 = vmatprep.subr.msk.mxu1 %vm729_vm8, %v719_v23 }
 0x117   :  { %1501 = vmatpush1.msk.msra.mxu1 %vm729_vm8, %v718_v28 }
 0x118   :  { %v717_v52 = vld [vmem:[#allocation3 + $0x70] sm:$0xf]  ;;  %v716_v54 = vld [vmem:[#allocation3 + $0x88] sm:$0xf] }
 0x119   :  { %1497 = vmatprep.subr.msk.mxu0 %vm729_vm8, %v717_v52  ;;  %v113_v59 = vpop.permute.xlu0 %112 }
 0x11a   :  { %1498 = vmatpush1.msk.msra.mxu0 %vm729_vm8, %v716_v54 }
 0x11b   :  { %v536_v8 = vpop.permute.xlu1 %535 }
 0x11d   :  { %v532_v15 = vpop.permute.xlu0 %531 }
 0x121   :  { %v270_v27 = vpop.permute.xlu0 %269 }
 0x122   :  { %v278_v29 = vsel %vm277_vm1, %v268_v49, %v270_v27 }
 0x123   :  { %286 = vst [vmem:[#allocation3 + $0x60] sm:$0xf] %v278_v29 }
 0x125   :  { %v534_v11 = vpop.permute.xlu0 %533 }
 0x126   :  { %v539_v5 = vsel %vm248_vm2, %v532_v15, %v534_v11  ;;  %v540_v36 = vsel %vm248_vm2, %v534_v11, %v536_v8 }
 0x127   :  { %547 = vst [vmem:[#allocation3 + $0xb0] sm:$0xf] %v539_v5  ;;  %548 = vst [vmem:[#allocation3 + $0x78] sm:$0xf] %v540_v36  ;;  %v276_v34 = vpop.permute.xlu1 %275 }
 0x129   :  { %v115_v40 = vpop.permute.xlu0 %114 }
 0x12a   :  { %v123_v1 = vsel %vm122_vm0, %v113_v59, %v115_v40 }
 0x12b   :  { %131 = vst [vmem:[#allocation3 + $0x100] sm:$0xf] %v123_v1  ;;  %v530_v45 = vpop.permute.xlu1 %529 }
 0x12c   :  { %v537_v47 = vsel %vm248_vm2, %v528_v2, %v530_v45  ;;  %v538_v23 = vsel %vm248_vm2, %v530_v45, %v532_v15 }
 0x12d   :  { %545 = vst [vmem:[#allocation3 + $0x108] sm:$0xf] %v537_v47  ;;  %546 = vst [vmem:[#allocation3 + $0xf0] sm:$0xf] %v538_v23  ;;  %v274_v49 = vpop.permute.xlu0 %273 }
 0x12e   :  { %v281_v28 = vsel %vm277_vm1, %v274_v49, %v276_v34 }
 0x12f   :  { %289 = vst [vmem:[#allocation3 + $0xd0] sm:$0xf] %v281_v28  ;;  %v272_v52 = vpop.permute.xlu1 %271 }
 0x130   :  { %v279_v54 = vsel %vm277_vm1, %v270_v27, %v272_v52  ;;  %v280_v29 = vsel %vm277_vm1, %v272_v52, %v274_v49 }
 0x131   :  { %287 = vst [vmem:[#allocation3 + $0xe8] sm:$0xf] %v279_v54  ;;  %288 = vst [vmem:[#allocation3 + $0x118] sm:$0xf] %v280_v29  ;;  %v606_v59 = vpop.permute.xlu0 %605 }
 0x133   :  { %v117_v8 = vpop.permute.xlu1 %116 }
 0x134   :  { %v124_v11 = vsel %vm122_vm0, %v115_v40, %v117_v8 }
 0x135   :  { %132 = vst [vmem:[#allocation3 + $0x18] sm:$0xf] %v124_v11  ;;  %v610_v2 = vpop.permute.xlu0 %609 }
 0x137   :  { %v455_v15 = vpop.permute.xlu1 %454 }
 0x139   :  { %v459_v5 = vpop.permute.xlu0 %458 }
 0x13b   :  { %v614_v36 = vpop.permute.xlu1 %613 }
 0x13d   :  { %v350_v1 = vpop.permute.xlu0 %349 }
 0x13f   :  { %v348_v45 = vpop.permute.xlu1 %347 }
 0x140   :  { %v358_v34 = vsel %vm357_vm5, %v348_v45, %v350_v1 }
 0x141   :  { %366 = vst [vmem:[#allocation3 + $0x60] sm:$0xf0] %v358_v34  ;;  %v612_v47 = vpop.permute.xlu0 %611 }
 0x142   :  { %v617_v27 = vsel %vm168_vm7, %v610_v2, %v612_v47  ;;  %v618_v23 = vsel %vm168_vm7, %v612_v47, %v614_v36 }
 0x143   :  { %625 = vst [vmem:[#allocation3 + $0xb0] sm:$0xf0] %v617_v27  ;;  %626 = vst [vmem:[#allocation3 + $0x78] sm:$0xf0] %v618_v23  ;;  %v463_v49 = vpop.permute.xlu1 %462 }
 0x145   :  { %v195_v28 = vpop.permute.xlu0 %194 }
 0x147   :  { %v193_v40 = vpop.permute.xlu1 %192 }
 0x148   :  { %v203_v52 = vsel %vm202_vm4, %v193_v40, %v195_v28 }
 0x149   :  { %211 = vst [vmem:[#allocation3 + $0x100] sm:$0xf0] %v203_v52  ;;  %v461_v54 = vpop.permute.xlu0 %460 }
 0x14a   :  { %v466_v29 = vsel %vm323_vm6, %v459_v5, %v461_v54  ;;  %v467_v11 = vsel %vm323_vm6, %v461_v54, %v463_v49  ;;  %v715_v45 = vld [vmem:[#allocation3 + $0x78] sm:$0xff]  ;;  %v714_v34 = vld [vmem:[#allocation3 + $0xb0] sm:$0xff] }
 0x14b   :  { %474 = vst [vmem:[#allocation3 + $0x50] sm:$0xf0] %v466_v29  ;;  %475 = vst [vmem:[#allocation3] sm:$0xf0] %v467_v11  ;;  %837 = vmatprep.subr.mxu1 %v715_v45  ;;  %v608_v26 = vpop.permute.xlu1 %607 }
 0x14c   :  { %v615_v36 = vsel %vm168_vm7, %v606_v59, %v608_v26  ;;  %v616_v47 = vsel %vm168_vm7, %v608_v26, %v610_v2  ;;  %838 = vmatpush1.msra.mxu1 %v714_v34 }
 0x14d   :  { %623 = vst [vmem:[#allocation3 + $0x108] sm:$0xf0] %v615_v36  ;;  %624 = vst [vmem:[#allocation3 + $0xf0] sm:$0xf0] %v616_v47  ;;  %v354_v27 = vpop.permute.xlu0 %353 }
 0x14f   :  { %v457_v23 = vpop.permute.xlu1 %456 }
 0x150   :  { %v464_v40 = vsel %vm323_vm6, %v455_v15, %v457_v23  ;;  %v465_v52 = vsel %vm323_vm6, %v457_v23, %v459_v5 }
 0x151   :  { %472 = vst [vmem:[#allocation3 + $0x28] sm:$0xf0] %v464_v40  ;;  %473 = vst [vmem:[#allocation3 + $0xa8] sm:$0xf0] %v465_v52  ;;  %v119_v49 = vpop.permute.xlu0 %118 }
 0x152   :  { %v125_v54 = vsel %vm122_vm0, %v117_v8, %v119_v49  ;;  %v711_v29 = vld [vmem:[#allocation3] sm:$0xff]  ;;  %v710_v11 = vld [vmem:[#allocation3 + $0x50] sm:$0xff] }
 0x153   :  { %133 = vst [vmem:[#allocation3 + $0xd8] sm:$0xf] %v125_v54  ;;  %839 = vmatprep.subr.mxu1 %v711_v29  ;;  %v352_v59 = vpop.permute.xlu1 %351  ;;  %v704_v54 = vld [vmem:[#allocation3 + $0x60] sm:$0xff] }
 0x154   :  { %v359_v26 = vsel %vm357_vm5, %v350_v1, %v352_v59  ;;  %v360_v2 = vsel %vm357_vm5, %v352_v59, %v354_v27  ;;  %840 = vmatpush1.msra.mxu1 %v710_v11  ;;  %v713_v45 = vld [vmem:[#allocation3 + $0xf0] sm:$0xff]  ;;  %v712_v34 = vld [vmem:[#allocation3 + $0x108] sm:$0xff] }
 0x155   :  { %367 = vst [vmem:[#allocation3 + $0xe8] sm:$0xf0] %v359_v26  ;;  %368 = vst [vmem:[#allocation3 + $0x118] sm:$0xf0] %v360_v2  ;;  %766 = vmatprep.subr.mxu0 %v713_v45  ;;  %v199_v15 = vpop.permute.xlu0 %198  ;;  %v58_v59 = vld [vmem:[%s2254_s2] sm:$0xff]  ;;  %v700_v26 = vld [vmem:[#allocation3 + $0x100] sm:$0xff] }
 0x156   :  { %767 = vmatpush1.msra.mxu0 %v712_v34  ;;  %v2264_v34 = vmov 0.0  }
 0x157   :  { %v197_v5 = vpop.permute.xlu1 %196 }
 0x158   :  { %v204_v8 = vsel %vm202_vm4, %v195_v28, %v197_v5  ;;  %v205_v36 = vsel %vm202_vm4, %v197_v5, %v199_v15  ;;  %v709_v47 = vld [vmem:[#allocation3 + $0xa8] sm:$0xff] }
 0x159   :  { %v708_v23 = vld [vmem:[#allocation3 + $0x28] sm:$0xff]  ;;  %212 = vst [vmem:[#allocation3 + $0x18] sm:$0xf0] %v204_v8  ;;  %213 = vst [vmem:[#allocation3 + $0xd8] sm:$0xf0] %v205_v36  ;;  %768 = vmatprep.subr.mxu0 %v709_v47 }
 0x15a   :  { %769 = vmatpush1.msra.mxu0 %v708_v23 }
 0x15b   :  { %v356_v1 = vpop.permute.xlu1 %355 }
 0x15c   :  { %v361_v40 = vsel %vm357_vm5, %v354_v27, %v356_v1  ;;  %v705_v52 = vld [vmem:[#allocation3 + $0xe8] sm:$0xff] }
 0x15d   :  { %369 = vst [vmem:[#allocation3 + $0xd0] sm:$0xf0] %v361_v40  ;;  %770 = vmatprep.subr.mxu0 %v705_v52 }
 0x15e   :  { %771 = vmatpush1.msra.mxu0 %v704_v54 }
 0x15f   :  { %v121_v29 = vpop.permute.xlu1 %120 }
 0x160   :  { %v126_v11 = vsel %vm122_vm0, %v119_v49, %v121_v29  ;;  %v701_v28 = vld [vmem:[#allocation3 + $0x18] sm:$0xff] }
 0x161   :  { %134 = vst [vmem:[#allocation3 + $0xe0] sm:$0xf] %v126_v11  ;;  %772 = vmatprep.subr.mxu0 %v701_v28  ;;  %v706_v49 = vld [vmem:[#allocation3 + $0x118] sm:$0xff] }
 0x162   :  { %773 = vmatpush1.msra.mxu0 %v700_v26  ;;  %v702_v8 = vld [vmem:[#allocation3 + $0xd8] sm:$0xff]  ;;  %v723_v47 = vpop.permute.xlu0 %722 }
 0x163   :  { %v201_v2 = vpop.permute.xlu1 %200  ;;  %1499 = vmatmul.mubr.msk.f32.vlgmr.msra.gmra.mxu0 %vm725_vm9, %v58_v59 }
 0x164   :  { %v206_v27 = vsel %vm202_vm4, %v199_v15, %v201_v2  ;;  %v707_v45 = vld [vmem:[#allocation3 + $0xd0] sm:$0xff]  ;;  %1354 = vmatprep.mubr.f32.mxu0 %v2264_v34 }
 0x165   :  { %214 = vst [vmem:[#allocation3 + $0xe0] sm:$0xf0] %v206_v27  ;;  %841 = vmatprep.subr.mxu1 %v707_v45 }
 0x166   :  { %842 = vmatpush1.msra.mxu1 %v706_v49 }
 0x16c   :  { %v703_v5 = vld [vmem:[#allocation3 + $0xe0] sm:$0xff] }
 0x16d   :  { %843 = vmatprep.subr.mxu1 %v703_v5 }
 0x16e   :  { %844 = vmatpush1.msra.mxu1 %v702_v8 }
 0x16f   :  { %1502 = vmatmul.mubr.msk.f32.vlgmr.msra.gmra.mxu1 %vm725_vm9, %v58_v59 }
 0x170   :  { %1425 = vmatprep.mubr.f32.mxu1 %v2264_v34 }
 0x223   :  { %v808_v36 = vpop.f32.mrf.mxu0 }
 0x224   :  { %v2002_v1 = vadd.f32 %v808_v36, %v723_v47 }
 0x225   :  { %v810_v23 = vpop.f32.mrf.mxu0 }
 0x226   :  { %v2004_v15 = vadd.f32 %v810_v23, %v723_v47  ;;  %v889_v40 = vmul.f32 %v2002_v1, %v2002_v1 }
 0x228   :  { %v890_v52 = vmul.f32 %v2004_v15, %v2004_v15  ;;  %v884_v11 = vadd.f32 %v2004_v15, %v2002_v1 }
 0x22a   :  { %v893_v27 = vadd.f32 %v890_v52, %v889_v40  ;;  %v902_v40 = vld [vmem:[%s2255_s4] sm:$0xff] }
 0x22f   :  { %v879_v54 = vpop.f32.mrf.mxu1 }
 0x230   :  { %v2010_v29 = vadd.f32 %v879_v54, %v723_v47 }
 0x231   :  { %v881_v28 = vpop.f32.mrf.mxu1 }
 0x232   :  { %v2014_v59 = vadd.f32 %v881_v28, %v723_v47  ;;  %v885_v26 = vadd.f32 %v884_v11, %v2010_v29  ;;  %v891_v2 = vmul.f32 %v2010_v29, %v2010_v29 }
 0x234   :  { %v886_v45 = vadd.f32 %v885_v26, %v2014_v59  ;;  %v892_v34 = vmul.f32 %v2014_v59, %v2014_v59  ;;  %v894_v49 = vadd.f32 %v893_v27, %v891_v2  ;;  %v906_v2 = vld [vmem:[%s2256_s5] sm:$0xff] }
 0x236   :  { %887 = vadd.xlane.f32.xlu1 %v886_v45  ;;  %v895_v5 = vadd.f32 %v894_v49, %v892_v34  ;;  %v1217_v45 = vmul.f32 0.0, %v1753_v18  ;;  %v1143_v49 = vmul.f32 0.0, %v1787_v42  ;;  %v1016_v18 = vmul.f32 0.0, %v1774_v33 }
 0x238   :  { %896 = vadd.xlane.f32.xlu0 %v895_v5  ;;  %v1180_v5 = vmul.f32 0.0, %v1747_v10  ;;  %v942_v10 = vmul.f32 0.0, %v1781_v38 }
 0x2bf   :  { %v888_v8 = vpop.xlane.xlu1 %887 }
 0x2c0   :  { %v898_v36 = vmul.f32 0.001953125, %v888_v8  ;;  %v1106_v8 = vmul.f32 0.0, %v1778_v35 }
 0x2c1   :  { %v897_v23 = vpop.xlane.xlu0 %896 }
 0x2c2   :  { %v900_v47 = vmul.f32 %v898_v36, %v898_v36  ;;  %v899_v54 = vmul.f32 0.001953125, %v897_v23  ;;  %v1053_v23 = vmul.f32 0.0, %v1745_v9 }
 0x2c4   :  { %v901_v28 = vsub.f32 %v899_v54, %v900_v47 }
 0x2c6   :  { %v903_v11 = vadd.f32 1e-05, %v901_v28 }
 0x2c8   :  { %1521 = vrsqrt.f32 %v903_v11 }
 0x2d5   :  { %v1522_v52 = vpop.eup %1521 }
 0x2d6   :  { %v905_v26 = vmul.f32 %v1522_v52, %v902_v40 }
 0x2d8   :  { %911 = vperm.xlu1 %1518, %v905_v26   ;;  %v907_v27 = vmul.f32 %v905_v26, %v898_v36  ;;  %v979_v36 = vmul.f32 0.0, %v1751_v12 }
 0x2da   :  { %v908_v34 = vsub.f32 %v906_v2, %v907_v27 }
 0x2dc   :  { %1231 = vrot.lane.b32.xlu1 %v1217_v45, %s1533_s19  ;;  %920 = vperm.xlu0 %1517, %v908_v34  }
 0x2e0   :  { %1157 = vrot.lane.b32.xlu1 %v1143_v49, %s1532_s1  ;;  %1194 = vrot.lane.b32.xlu0 %v1180_v5, %s1531_s18 }
 0x2e4   :  { %1120 = vrot.lane.b32.xlu1 %v1106_v8, %s1530_s14  ;;  %1063 = vrot.lane.b32.xlu0 %v1053_v23, %s1527_s12 }
 0x2e8   :  { %1026 = vrot.lane.b32.xlu1 %v1016_v18, %s1529_s13  ;;  %989 = vrot.lane.b32.xlu0 %v979_v36, %s1526_s30 }
 0x2ec   :  { %952 = vrot.lane.b32.xlu1 %v942_v10, %s1525_s17 }
 0x353   :  { %v912_v42 = vpop.permute.xlu1 %911 }
 0x354   :  { %v914_v35 = vmul.f32 %v912_v42, %v2002_v1  ;;  %v915_v9 = vmul.f32 %v912_v42, %v2004_v15  ;;  %v916_v47 = vmul.f32 %v912_v42, %v2010_v29  ;;  %v917_v54 = vmul.f32 %v912_v42, %v2014_v59 }
 0x357   :  { %v921_v33 = vpop.permute.xlu0 %920 }
 0x358   :  { %v923_v28 = vadd.f32 %v921_v33, %v914_v35  ;;  %v924_v12 = vadd.f32 %v921_v33, %v915_v9  ;;  %v925_v11 = vadd.f32 %v921_v33, %v916_v47  ;;  %v926_v40 = vadd.f32 %v921_v33, %v917_v54 }
 0x35a   :  { %v2048_v52 = vmax.f32 %v923_v28, 0.0  ;;  %v2050_v26 = vmax.f32 %v924_v12, 0.0  ;;  %v2052_v38 = vmax.f32 %v925_v11, 0.0  ;;  %v2054_v2 = vmax.f32 %v926_v40, 0.0 }
 0x35c   :  { %931 = vst [vmem:[#allocation2 + $0x28] sm:$0xff] %v2048_v52  ;;  %932 = vst [vmem:[#allocation2] sm:$0xff] %v2050_v26  ;;  %v1214_v27 = vmul.f32 %v2050_v26, %v1762_v22  ;;  %v1213_v45 = vmul.f32 %v2048_v52, %v1720_v56  ;;  %v1215_v34 = vmul.f32 %v2052_v38, %v1725_v61 }
 0x35d   :  { %933 = vst [vmem:[#allocation2 + $0x10] sm:$0xff] %v2052_v38  ;;  %934 = vst [vmem:[#allocation2 + $0x18] sm:$0xff] %v2054_v2  ;;  %v1178_v49 = vmul.f32 %v2052_v38, %v1836_v31  ;;  %v1177_v22 = vmul.f32 %v2050_v26, %v1899_v32  ;;  %v1140_v56 = vmul.f32 %v2050_v26, %v1817_v60 }
 0x35e   :  { %1225 = vrot.lane.b32.xlu1 %v1214_v27, %s1533_s19  ;;  %1223 = vrot.lane.b32.xlu0 %v1213_v45, %s1533_s19  ;;  %v2078_v5 = vmul.f32 %v2050_v26, %v1639_v17  ;;  %v2082_v61 = vmul.f32 %v2048_v52, %v1632_v14  ;;  %v2086_v31 = vmul.f32 %v2054_v2, %v1649_v20 }
 0x35f   :  { %v2090_v8 = vmul.f32 %v2052_v38, %v1636_v16  ;;  %v1216_v14 = vmul.f32 %v2054_v2, %v1758_v21  ;;  %v1176_v17 = vmul.f32 %v2048_v52, %v1727_v62  ;;  %v1141_v16 = vmul.f32 %v2052_v38, %v1785_v41 }
 0x360   :  { %1094 = vst [vmem:[#allocation3 + $0x70] sm:$0xff] %v2078_v5  ;;  %1093 = vst [vmem:[#allocation3 + $0x88] sm:$0xff] %v2082_v61  ;;  %v1139_v20 = vmul.f32 %v2048_v52, %v1739_v4  ;;  %v1103_v21 = vmul.f32 %v2050_v26, %v1915_v46  ;;  %v1104_v62 = vmul.f32 %v2052_v38, %v1851_v44 }
 0x361   :  { %1096 = vst [vmem:[#allocation3 + $0x68] sm:$0xff] %v2086_v31  ;;  %1095 = vst [vmem:[#allocation3 + $0xc0] sm:$0xff] %v2090_v8  ;;  %v1179_v41 = vmul.f32 %v2054_v2, %v1870_v7  ;;  %v1142_v4 = vmul.f32 %v2054_v2, %v1801_v50  ;;  %v1102_v60 = vmul.f32 %v2048_v52, %v1737_v3 }
 0x362   :  { %1227 = vrot.lane.b32.xlu1 %v1215_v34, %s1533_s19  ;;  %1190 = vrot.lane.b32.xlu0 %v1178_v49, %s1531_s18  ;;  %v1054_v44 = vmul.f32 %v2048_v52, %v1861_v55  ;;  %v1055_v7 = vmul.f32 %v2050_v26, %v1926_v6  ;;  %v1105_v50 = vmul.f32 %v2054_v2, %v1890_v63  ;;  %v936_v6 = vld [vmem:[%s2257_s7] sm:$0xff] }
 0x363   :  { %v1018_v3 = vmul.f32 %v2050_v26, %v1828_v25  ;;  %v1017_v55 = vmul.f32 %v2048_v52, %v1795_v48  ;;  %v981_v32 = vmul.f32 %v2050_v26, %v1944_v30  ;;  %v980_v63 = vmul.f32 %v2048_v52, %v1881_v0  ;;  %v1195_v30 = vpop.permute.xlu0 %1194 }
 0x364   :  { %v1057_v25 = vmul.f32 %v2054_v2, %v1803_v51  ;;  %v1056_v48 = vmul.f32 %v2052_v38, %v1906_v39  ;;  %v944_v46 = vmul.f32 %v2050_v26, %v1844_v37  ;;  %v943_v0 = vmul.f32 %v2048_v52, %v1809_v57 }
 0x365   :  { %v1020_v51 = vmul.f32 %v2054_v2, %v1811_v58  ;;  %v1019_v39 = vmul.f32 %v2052_v38, %v1823_v13  ;;  %v982_v37 = vmul.f32 %v2052_v38, %v1932_v19  ;;  %v983_v57 = vmul.f32 %v2054_v2, %v1908_v43  ;;  %v1232_v43 = vpop.permute.xlu1 %1231 }
 0x366   :  { %1188 = vrot.lane.b32.xlu1 %v1177_v22, %s1531_s18  ;;  %1151 = vrot.lane.b32.xlu0 %v1140_v56, %s1532_s1  ;;  %v945_v58 = vmul.f32 %v2052_v38, %v1937_v24  ;;  %v946_v13 = vmul.f32 %v2054_v2, %v1919_v53 }
 0x367   :  { %v1064_v18 = vpop.permute.xlu0 %1063 }
 0x369   :  { %v1158_v19 = vpop.permute.xlu1 %1157 }
 0x36a   :  { %1229 = vrot.lane.b32.xlu0 %v1216_v14, %s1533_s19  ;;  %1186 = vrot.lane.b32.xlu1 %v1176_v17, %s1531_s18 }
 0x36b   :  { %v2181_v24 = vpop.permute.xlu0 %989 }
 0x36d   :  { %v1121_v23 = vpop.permute.xlu1 %1120 }
 0x36e   :  { %1153 = vrot.lane.b32.xlu1 %v1141_v16, %s1532_s1  ;;  %1149 = vrot.lane.b32.xlu0 %v1139_v20, %s1532_s1 }
 0x371   :  { %v2179_v36 = vpop.permute.xlu1 %1026 }
 0x372   :  { %1114 = vrot.lane.b32.xlu1 %v1103_v21, %s1530_s14  ;;  %1116 = vrot.lane.b32.xlu0 %v1104_v62, %s1530_s14 }
 0x375   :  { %v2183_v10 = vpop.permute.xlu1 %952 }
 0x376   :  { %1192 = vrot.lane.b32.xlu1 %v1179_v41, %s1531_s18  ;;  %1155 = vrot.lane.b32.xlu0 %v1142_v4, %s1532_s1 }
 0x37a   :  { %1112 = vrot.lane.b32.xlu1 %v1102_v60, %s1530_s14  ;;  %1065 = vrot.lane.b32.xlu0 %v1054_v44, %s1527_s12 }
 0x37e   :  { %1067 = vrot.lane.b32.xlu1 %v1055_v7, %s1527_s12  ;;  %1118 = vrot.lane.b32.xlu0 %v1105_v50, %s1530_s14 }
 0x382   :  { %1030 = vrot.lane.b32.xlu0 %v1018_v3, %s1529_s13  ;;  %1028 = vrot.lane.b32.xlu1 %v1017_v55, %s1529_s13 }
 0x386   :  { %993 = vrot.lane.b32.xlu1 %v981_v32, %s1526_s30  ;;  %991 = vrot.lane.b32.xlu0 %v980_v63, %s1526_s30 }
 0x38a   :  { %1071 = vrot.lane.b32.xlu1 %v1057_v25, %s1527_s12  ;;  %1069 = vrot.lane.b32.xlu0 %v1056_v48, %s1527_s12 }
 0x38e   :  { %956 = vrot.lane.b32.xlu0 %v944_v46, %s1525_s17  ;;  %954 = vrot.lane.b32.xlu1 %v943_v0, %s1525_s17 }
 0x392   :  { %1034 = vrot.lane.b32.xlu0 %v1020_v51, %s1529_s13  ;;  %1032 = vrot.lane.b32.xlu1 %v1019_v39, %s1529_s13 }
 0x396   :  { %995 = vrot.lane.b32.xlu0 %v982_v37, %s1526_s30  ;;  %997 = vrot.lane.b32.xlu1 %v983_v57, %s1526_s30 }
 0x39a   :  { %958 = vrot.lane.b32.xlu0 %v945_v58, %s1525_s17  ;;  %960 = vrot.lane.b32.xlu1 %v946_v13, %s1525_s17 }
 0x39e   :  { %1283 = vperm.xlu0 %1517, %v936_v6  }
 0x3d0   :  { %v1226_v53 = vpop.permute.xlu1 %1225  ;;  %v1224_v42 = vpop.permute.xlu0 %1223 }
 0x3d1   :  { %v1233_v35 = vsel %vm93_vm3, %v1224_v42, %v1226_v53 }
 0x3d4   :  { %v1228_v9 = vpop.permute.xlu1 %1227  ;;  %v1191_v47 = vpop.permute.xlu0 %1190 }
 0x3d5   :  { %v1234_v54 = vsel %vm93_vm3, %v1226_v53, %v1228_v9 }
 0x3d6   :  { %1304 = vmatprep.subr.mxu0 %v1234_v54 }
 0x3d7   :  { %1305 = vmatpush1.msra.mxu0 %v1233_v35 }
 0x3d8   :  { %v1189_v33 = vpop.permute.xlu1 %1188  ;;  %v1152_v28 = vpop.permute.xlu0 %1151 }
 0x3d9   :  { %v1197_v12 = vsel %vm168_vm7, %v1189_v33, %v1191_v47 }
 0x3da   :  { %1306 = vmatprep.subr.mxu0 %v1197_v12 }
 0x3dc   :  { %v1187_v11 = vpop.permute.xlu1 %1186  ;;  %v1230_v40 = vpop.permute.xlu0 %1229 }
 0x3dd   :  { %v1196_v52 = vsel %vm168_vm7, %v1187_v11, %v1189_v33  ;;  %v1235_v26 = vsel %vm93_vm3, %v1228_v9, %v1230_v40  ;;  %v1236_v38 = vsel %vm93_vm3, %v1230_v40, %v1232_v43  ;;  %v935_v43 = vld [vmem:[%s2258_s6] sm:$0xff] }
 0x3de   :  { %1307 = vmatpush1.msra.mxu0 %v1196_v52  ;;  %1375 = vmatprep.subr.mxu1 %v1236_v38 }
 0x3df   :  { %1376 = vmatpush1.msra.mxu1 %v1235_v26 }
 0x3e0   :  { %v1154_v2 = vpop.permute.xlu1 %1153  ;;  %v1150_v27 = vpop.permute.xlu0 %1149 }
 0x3e1   :  { %v1160_v45 = vsel %vm248_vm2, %v1152_v28, %v1154_v2  ;;  %v1159_v34 = vsel %vm248_vm2, %v1150_v27, %v1152_v28 }
 0x3e2   :  { %1308 = vmatprep.subr.mxu0 %v1160_v45 }
 0x3e3   :  { %1309 = vmatpush1.msra.mxu0 %v1159_v34 }
 0x3e4   :  { %v1115_v49 = vpop.permute.xlu1 %1114  ;;  %v1117_v22 = vpop.permute.xlu0 %1116 }
 0x3e5   :  { %v1123_v56 = vsel %vm323_vm6, %v1115_v49, %v1117_v22 }
 0x3e6   :  { %1310 = vmatprep.subr.mxu0 %v1123_v56 }
 0x3e8   :  { %v1193_v14 = vpop.permute.xlu1 %1192  ;;  %v1156_v17 = vpop.permute.xlu0 %1155 }
 0x3e9   :  { %v1198_v16 = vsel %vm168_vm7, %v1191_v47, %v1193_v14  ;;  %v1199_v20 = vsel %vm168_vm7, %v1193_v14, %v1195_v30  ;;  %v1161_v21 = vsel %vm248_vm2, %v1154_v2, %v1156_v17  ;;  %v1162_v62 = vsel %vm248_vm2, %v1156_v17, %v1158_v19 }
 0x3ea   :  { %1377 = vmatprep.subr.mxu1 %v1199_v20 }
 0x3eb   :  { %1378 = vmatpush1.msra.mxu1 %v1198_v16 }
 0x3ec   :  { %v1113_v41 = vpop.permute.xlu1 %1112  ;;  %v1066_v4 = vpop.permute.xlu0 %1065  ;;  %1379 = vmatprep.subr.mxu1 %v1162_v62 }
 0x3ed   :  { %v1122_v60 = vsel %vm323_vm6, %v1113_v41, %v1115_v49  ;;  %v1073_v44 = vsel %vm357_vm5, %v1064_v18, %v1066_v4  ;;  %1380 = vmatpush1.msra.mxu1 %v1161_v21 }
 0x3ee   :  { %1081 = vst [vmem:[#allocation3 + $0x108] sm:$0xff] %v1073_v44  ;;  %1311 = vmatpush1.msra.mxu0 %v1122_v60 }
 0x3ef   :  { %1312 = vmatprep.subr.mxu0 %v2078_v5 }
 0x3f0   :  { %v1068_v7 = vpop.permute.xlu1 %1067  ;;  %v1119_v50 = vpop.permute.xlu0 %1118  ;;  %1313 = vmatpush1.msra.mxu0 %v2082_v61 }
 0x3f1   :  { %v1074_v3 = vsel %vm357_vm5, %v1066_v4, %v1068_v7  ;;  %v1124_v55 = vsel %vm323_vm6, %v1117_v22, %v1119_v50  ;;  %v1125_v32 = vsel %vm323_vm6, %v1119_v50, %v1121_v23 }
 0x3f2   :  { %1082 = vst [vmem:[#allocation3 + $0xf0] sm:$0xff] %v1074_v3  ;;  %1314 = vmatprep.subr.mxu0 %v1074_v3  ;;  %1381 = vmatprep.subr.mxu1 %v1125_v32 }
 0x3f3   :  { %1315 = vmatpush1.msra.mxu0 %v1073_v44  ;;  %1382 = vmatpush1.msra.mxu1 %v1124_v55  ;;  %v1454_v55 = vld [vmem:[%s2260_s9] sm:$0xff] }
 0x3f4   :  { %v1029_v63 = vpop.permute.xlu1 %1028  ;;  %v1031_v25 = vpop.permute.xlu0 %1030  ;;  %1383 = vmatprep.subr.mxu1 %v2086_v31 }
 0x3f5   :  { %v1036_v5 = vsel %vm277_vm1, %v2179_v36, %v1029_v63  ;;  %v1037_v61 = vsel %vm277_vm1, %v1029_v63, %v1031_v25  ;;  %1384 = vmatpush1.msra.mxu1 %v2090_v8 }
 0x3f6   :  { %1044 = vst [vmem:[#allocation3 + $0x28] sm:$0xff] %v1036_v5  ;;  %1045 = vst [vmem:[#allocation3 + $0xa8] sm:$0xff] %v1037_v61  ;;  %1316 = vmatprep.subr.mxu0 %v1037_v61 }
 0x3f7   :  { %1317 = vmatpush1.msra.mxu0 %v1036_v5 }
 0x3f8   :  { %v994_v48 = vpop.permute.xlu1 %993  ;;  %v992_v46 = vpop.permute.xlu0 %991 }
 0x3f9   :  { %v999_v0 = vsel %vm202_vm4, %v2181_v24, %v992_v46  ;;  %v1000_v51 = vsel %vm202_vm4, %v992_v46, %v994_v48 }
 0x3fa   :  { %1007 = vst [vmem:[#allocation3 + $0x60] sm:$0xff] %v999_v0  ;;  %1008 = vst [vmem:[#allocation3 + $0xe8] sm:$0xff] %v1000_v51  ;;  %1318 = vmatprep.subr.mxu0 %v1000_v51 }
 0x3fb   :  { %1319 = vmatpush1.msra.mxu0 %v999_v0 }
 0x3fc   :  { %v1072_v31 = vpop.permute.xlu1 %1071  ;;  %v1070_v39 = vpop.permute.xlu0 %1069 }
 0x3fd   :  { %v1075_v37 = vsel %vm357_vm5, %v1068_v7, %v1070_v39  ;;  %v1076_v8 = vsel %vm357_vm5, %v1070_v39, %v1072_v31  ;;  %v1450_v7 = vld [vmem:[%s2259_s8] sm:$0xff] }
 0x3fe   :  { %1083 = vst [vmem:[#allocation3 + $0xb0] sm:$0xff] %v1075_v37  ;;  %1084 = vst [vmem:[#allocation3 + $0x78] sm:$0xff] %v1076_v8  ;;  %1385 = vmatprep.subr.mxu1 %v1076_v8 }
 0x3ff   :  { %1386 = vmatpush1.msra.mxu1 %v1075_v37 }
 0x400   :  { %v955_v57 = vpop.permute.xlu1 %954  ;;  %v957_v58 = vpop.permute.xlu0 %956 }
 0x401   :  { %v962_v13 = vsel %vm122_vm0, %v2183_v10, %v955_v57  ;;  %v963_v6 = vsel %vm122_vm0, %v955_v57, %v957_v58 }
 0x402   :  { %970 = vst [vmem:[#allocation3 + $0x100] sm:$0xff] %v962_v13  ;;  %971 = vst [vmem:[#allocation3 + $0x18] sm:$0xff] %v963_v6  ;;  %1320 = vmatprep.subr.mxu0 %v963_v6 }
 0x403   :  { %1321 = vmatpush1.msra.mxu0 %v962_v13 }
 0x404   :  { %v1033_v19 = vpop.permute.xlu1 %1032  ;;  %v1035_v30 = vpop.permute.xlu0 %1034  ;;  %1503 = vmatmul.mubr.msk.f32.vlgmr.msra.gmra.mxu0 %vm1286_vm10, %v935_v43 }
 0x405   :  { %v1038_v23 = vsel %vm277_vm1, %v1031_v25, %v1033_v19  ;;  %v1039_v18 = vsel %vm277_vm1, %v1033_v19, %v1035_v30 }
 0x406   :  { %1046 = vst [vmem:[#allocation3 + $0x50] sm:$0xff] %v1038_v23  ;;  %1047 = vst [vmem:[#allocation3] sm:$0xff] %v1039_v18  ;;  %1387 = vmatprep.subr.mxu1 %v1039_v18 }
 0x407   :  { %1388 = vmatpush1.msra.mxu1 %v1038_v23 }
 0x408   :  { %v998_v36 = vpop.permute.xlu1 %997  ;;  %v996_v24 = vpop.permute.xlu0 %995 }
 0x409   :  { %v1001_v10 = vsel %vm202_vm4, %v994_v48, %v996_v24  ;;  %v1002_v53 = vsel %vm202_vm4, %v996_v24, %v998_v36 }
 0x40a   :  { %1009 = vst [vmem:[#allocation3 + $0x118] sm:$0xff] %v1001_v10  ;;  %1010 = vst [vmem:[#allocation3 + $0xd0] sm:$0xff] %v1002_v53  ;;  %1389 = vmatprep.subr.mxu1 %v1002_v53 }
 0x40b   :  { %1390 = vmatpush1.msra.mxu1 %v1001_v10 }
 0x40c   :  { %v961_v42 = vpop.permute.xlu1 %960  ;;  %v959_v35 = vpop.permute.xlu0 %958 }
 0x40d   :  { %v964_v9 = vsel %vm122_vm0, %v957_v58, %v959_v35  ;;  %v965_v47 = vsel %vm122_vm0, %v959_v35, %v961_v42 }
 0x40e   :  { %972 = vst [vmem:[#allocation3 + $0xd8] sm:$0xff] %v964_v9  ;;  %973 = vst [vmem:[#allocation3 + $0xe0] sm:$0xff] %v965_v47  ;;  %1391 = vmatprep.subr.mxu1 %v965_v47 }
 0x40f   :  { %1392 = vmatpush1.msra.mxu1 %v964_v9 }
 0x410   :  { %1504 = vmatmul.mubr.msk.f32.vlgmr.msra.gmra.mxu1 %vm1286_vm10, %v935_v43 }
 0x419   :  { %v1284_v28 = vpop.permute.xlu0 %1283 }
 0x4c4   :  { %v1356_v54 = vpop.f32.mrf.mxu0 }
 0x4c5   :  { %v1357_v11 = vadd.f32 %v1356_v54, %v1284_v28 }
 0x4c6   :  { %v1358_v33 = vpop.f32.mrf.mxu0 }
 0x4c7   :  { %v1359_v12 = vadd.f32 %v1358_v33, %v1284_v28  ;;  %v1437_v26 = vmul.f32 %v1357_v11, %v1357_v11 }
 0x4c9   :  { %v1438_v40 = vmul.f32 %v1359_v12, %v1359_v12  ;;  %v1432_v38 = vadd.f32 %v1359_v12, %v1357_v11 }
 0x4cb   :  { %v1441_v45 = vadd.f32 %v1438_v40, %v1437_v26 }
 0x4d0   :  { %v1427_v52 = vpop.f32.mrf.mxu1 }
 0x4d1   :  { %v1428_v2 = vadd.f32 %v1427_v52, %v1284_v28 }
 0x4d2   :  { %v1429_v27 = vpop.f32.mrf.mxu1 }
 0x4d3   :  { %v1433_v34 = vadd.f32 %v1432_v38, %v1428_v2  ;;  %v1439_v49 = vmul.f32 %v1428_v2, %v1428_v2  ;;  %v1430_v22 = vadd.f32 %v1429_v27, %v1284_v28 }
 0x4d5   :  { %v1440_v56 = vmul.f32 %v1430_v22, %v1430_v22  ;;  %v1434_v14 = vadd.f32 %v1433_v34, %v1430_v22  ;;  %v1442_v17 = vadd.f32 %v1441_v45, %v1439_v49 }
 0x4d7   :  { %1435 = vadd.xlane.f32.xlu1 %v1434_v14  ;;  %v1443_v16 = vadd.f32 %v1442_v17, %v1440_v56 }
 0x4d9   :  { %1444 = vadd.xlane.f32.xlu0 %v1443_v16 }
 0x560   :  { %v1436_v20 = vpop.xlane.xlu1 %1435 }
 0x561   :  { %v1446_v21 = vmul.f32 0.001953125, %v1436_v20 }
 0x562   :  { %v1445_v62 = vpop.xlane.xlu0 %1444 }
 0x563   :  { %v1448_v41 = vmul.f32 %v1446_v21, %v1446_v21  ;;  %v1447_v4 = vmul.f32 0.001953125, %v1445_v62 }
 0x565   :  { %v1449_v60 = vsub.f32 %v1447_v4, %v1448_v41 }
 0x567   :  { %v1451_v44 = vadd.f32 1e-05, %v1449_v60 }
 0x569   :  { %1523 = vrsqrt.f32 %v1451_v44 }
 0x576   :  { %v1524_v50 = vpop.eup %1523 }
 0x577   :  { %v1453_v3 = vmul.f32 %v1524_v50, %v1450_v7 }
 0x579   :  { %1459 = vperm.xlu0 %1517, %v1453_v3   ;;  %v1455_v32 = vmul.f32 %v1453_v3, %v1446_v21 }
 0x57b   :  { %v1456_v63 = vsub.f32 %v1454_v55, %v1455_v32 }
 0x57d   :  { %1468 = vperm.xlu1 %1518, %v1456_v63  }
 0x5f4   :  { %v1460_v25 = vpop.permute.xlu0 %1459 }
 0x5f5   :  { %v1462_v5 = vmul.f32 %v1460_v25, %v1357_v11  ;;  %v1463_v61 = vmul.f32 %v1460_v25, %v1359_v12  ;;  %v1464_v48 = vmul.f32 %v1460_v25, %v1428_v2  ;;  %v1465_v46 = vmul.f32 %v1460_v25, %v1430_v22 }
 0x5f8   :  { %v1469_v0 = vpop.permute.xlu1 %1468 }
 0x5f9   :  { %v1471_v51 = vadd.f32 %v1469_v0, %v1462_v5  ;;  %v1472_v31 = vadd.f32 %v1469_v0, %v1463_v61  ;;  %v1473_v39 = vadd.f32 %v1469_v0, %v1464_v48  ;;  %v1474_v37 = vadd.f32 %v1469_v0, %v1465_v46 }
 0x5fb   :  { %v1475_v8 = vadd.f32 %v1471_v51, %v2002_v1  ;;  %v1476_v57 = vadd.f32 %v1472_v31, %v2004_v15  ;;  %v1477_v58 = vadd.f32 %v1473_v39, %v2010_v29  ;;  %v1478_v13 = vadd.f32 %v1474_v37, %v2014_v59 }
 0x5fd   :  { %v1479_v6 = vmax.f32 %v1475_v8, 0.0  ;;  %v1480_v43 = vmax.f32 %v1476_v57, 0.0  ;;  %v1481_v19 = vmax.f32 %v1477_v58, 0.0  ;;  %v1482_v30 = vmax.f32 %v1478_v13, 0.0 }
 0x5ff   :  { %1483 = vst [vmem:[%s2261_s10] sm:$0xff] %v1479_v6  ;;  %1484 = vst [vmem:[%s2261_s10 + $0x8] sm:$0xff] %v1480_v43 }
 0x600   :  { %1505 = vst [vmem:[%s2261_s10 + $0x10] sm:$0xff] %v1481_v19  ;;  %1506 = vst [vmem:[%s2261_s10 + $0x18] sm:$0xff] %v1482_v30 }

</bundles_post_ra>
